<compile_context>
chip_gen: v7x
topology: tpu7x:2x2x1
jax: 0.10.0
libtpu: 0.0.40
codegen_flags: <defaults>
</compile_context>

<pallas_src>
import jax
import jax.numpy as jnp
from jax.experimental import pallas as pl
from jax.experimental.pallas import tpu as pltpu

H = 64  # GRU hidden size, fixed by the module


def gru_waypoints_kernel(x_ref, vel_ref, w_gates_ref, w_dec_ref, small_ref,
                         out_ref, xp_ref, h_all_ref):
    f32 = jnp.float32
    bs = vel_ref.shape[0]            # padded batch
    d = x_ref.shape[1]               # padded input dim
    T = x_ref.shape[0] // bs         # number of waypoints

    # ---- unpack the packed small-parameter block (one DMA instead of six) --
    b_comb = small_ref[0:1, :]                   # (1,3H) = b_ih + [b_hr|b_hz|0]
    b_hn   = small_ref[1:2, 0:H]                 # (1,H)
    w_enc  = small_ref[1:2, H:2 * H]             # (1,H)
    b_enc  = small_ref[1:2, 2 * H:3 * H]         # (1,H)
    b_dec  = small_ref[2:3, 0:2]                 # (1,2)

    # ---- hoisted gate-weight loads (bf16), outside the unrolled loop -------
    w_ih = w_gates_ref[0:d, :]                   # (d, 3H) bf16
    w_hh = w_gates_ref[d:, :]                    # (H, 3H) bf16

    # ---- encoder Linear(1, 64): K=1 contraction -> VPU outer product -------
    h = vel_ref[...] * w_enc + b_enc             # (bs,1)*(1,H) -> (bs,H) f32

    # ---- input-side gate projections hoisted out of the recurrence ---------
    # one bf16 matmul with f32 accumulation; b_ih and the r/z recurrent
    # biases folded in once; result parked in VMEM scratch
    xp_ref[...] = jnp.dot(x_ref[...], w_ih,
                          preferred_element_type=f32) + b_comb   # (T*bs, 3H)

    # ---- GRU recurrence: exactly one bf16 MXU matmul per step --------------
    for t in range(T):
        xp_t = xp_ref[t * bs:(t + 1) * bs, :]                    # (bs, 3H) f32
        hp = jnp.dot(h.astype(jnp.bfloat16), w_hh,
                     preferred_element_type=f32)                 # (bs, 3H) f32
        # fused r/z: one lane-aligned 128-wide add + one EUP sigmoid
        rz = jax.nn.sigmoid(xp_t[:, :2 * H] + hp[:, :2 * H])     # (bs, 2H)
        r = rz[:, :H]
        z = rz[:, H:]
        n = jnp.tanh(xp_t[:, 2 * H:] + r * (hp[:, 2 * H:] + b_hn))
        h = (1.0 - z) * n + z * h                                # (bs, H) f32
        h_all_ref[t * bs:(t + 1) * bs, :] = h                    # ref-backed storage

    # ---- decoder Linear(64, 2): single matmul over all steps ---------------
    y = jnp.dot(h_all_ref[...], w_dec_ref[...],
                preferred_element_type=f32) + b_dec              # (T*bs, 2)

    # ---- cumsum over waypoints, streamed straight into the output ----------
    cum = jnp.zeros((bs, 2), f32)
    for t in range(T):
        cum = cum + y[t * bs:(t + 1) * bs, :]
        out_ref[t * bs:(t + 1) * bs, :] = cum


def init_params(key, input_dim):
    """Deterministic synthetic init mirroring the module's parameter shapes.

    nn.GRU stores packed (3H, D)/(3H, H) weights with gate order [r, z, n];
    here they are kept packed but pre-transposed to (in, 3H).
    """
    ks = jax.random.split(key, 8)
    s = 1.0 / jnp.sqrt(jnp.float32(H))
    u = lambda k, shape: jax.random.uniform(k, shape, jnp.float32, -s, s)
    return {
        "w_enc": u(ks[0], (1, H)),             # encoder: Linear(1, 64) (in, out)
        "b_enc": u(ks[1], (1, H)),
        "w_ih": u(ks[2], (input_dim, 3 * H)),  # GRU weight_ih_l0^T, cols [r|z|n]
        "w_hh": u(ks[3], (H, 3 * H)),          # GRU weight_hh_l0^T, cols [r|z|n]
        "b_ih": u(ks[4], (1, 3 * H)),
        "b_hh": u(ks[5], (1, 3 * H)),
        "w_dec": u(ks[6], (H, 2)),             # decoder: Linear(64, 2)
        "b_dec": u(ks[7], (1, 2)),
    }


def gru_waypoints_predictor(x, measurements, p):
    bs, T, D = x.shape
    bs_pad = ((bs + 15) // 16) * 16    # 16 rows: bf16-sublane-dense h cast
    D_pad = ((D + 15) // 16) * 16      # keeps the packed-weight row split aligned

    vel = measurements[:, 6:7].astype(jnp.float32)          # (bs, 1) -- glue
    x_f = x.astype(jnp.float32)
    if bs_pad != bs:
        x_f = jnp.pad(x_f, ((0, bs_pad - bs), (0, 0), (0, 0)))
        vel = jnp.pad(vel, ((0, bs_pad - bs), (0, 0)))
    if D_pad != D:
        x_f = jnp.pad(x_f, ((0, 0), (0, 0), (0, D_pad - D)))
        w_ih = jnp.pad(p["w_ih"], ((0, D_pad - D), (0, 0)))
    else:
        w_ih = p["w_ih"]

    # time-major, pre-flattened: row t*bs_pad + b == x[b, t, :]   (glue)
    x_flat = (jnp.transpose(x_f, (1, 0, 2))
              .reshape(T * bs_pad, D_pad).astype(jnp.bfloat16))

    # packed bf16 gate weights: rows [0:D_pad] = W_ih^T, rows [D_pad:] = W_hh^T
    w_gates = jnp.concatenate([w_ih, p["w_hh"]], axis=0).astype(jnp.bfloat16)

    # packed small parameters (one f32 operand, 8 x 3H):
    #   row 0: b_ih + [b_hr | b_hz | 0]   (r/z recurrent biases folded)
    #   row 1: [b_hn | w_enc | b_enc]
    #   row 2: [b_dec | 0 ...]
    b_comb = p["b_ih"] + jnp.concatenate(
        [p["b_hh"][:, :2 * H], jnp.zeros((1, H), jnp.float32)], axis=1)
    row1 = jnp.concatenate([p["b_hh"][:, 2 * H:], p["w_enc"], p["b_enc"]], axis=1)
    row2 = jnp.concatenate([p["b_dec"], jnp.zeros((1, 3 * H - 2), jnp.float32)], axis=1)
    small = jnp.concatenate(
        [b_comb, row1, row2, jnp.zeros((5, 3 * H), jnp.float32)], axis=0)

    operands = (x_flat, vel, w_gates, p["w_dec"], small)
    vmem = lambda: pl.BlockSpec(memory_space=pltpu.MemorySpace.VMEM)

    out_flat = pl.pallas_call(
        gru_waypoints_kernel,
        out_shape=jax.ShapeDtypeStruct((T * bs_pad, 2), jnp.float32),
        in_specs=[vmem() for _ in operands],
        out_specs=vmem(),
        scratch_shapes=[pltpu.VMEM((T * bs_pad, 3 * H), jnp.float32),  # xp
                        pltpu.VMEM((T * bs_pad, H), jnp.float32)],     # h_all
    )(*operands)

    # (T*bs_pad, 2) -> (bs, T, 2), dropping batch padding (glue)
    out = out_flat.reshape(T, bs_pad, 2).transpose(1, 0, 2)[:bs]
    return out


def reference(x, measurements, p):
    """Pure-JAX f32 reference of the PyTorch forward (for correctness check)."""
    vel = measurements[:, 6:7]
    h = vel @ p["w_enc"] + p["b_enc"]
    w_ir, w_iz, w_in = (p["w_ih"][:, :H], p["w_ih"][:, H:2 * H], p["w_ih"][:, 2 * H:])
    w_hr, w_hz, w_hn = (p["w_hh"][:, :H], p["w_hh"][:, H:2 * H], p["w_hh"][:, 2 * H:])
    b_ir, b_iz, b_in = (p["b_ih"][:, :H], p["b_ih"][:, H:2 * H], p["b_ih"][:, 2 * H:])
    b_hr, b_hz, b_hn = (p["b_hh"][:, :H], p["b_hh"][:, H:2 * H], p["b_hh"][:, 2 * H:])
    outs = []
    for t in range(x.shape[1]):
        x_t = x[:, t, :]
        r = jax.nn.sigmoid(x_t @ w_ir + b_ir + h @ w_hr + b_hr)
        z = jax.nn.sigmoid(x_t @ w_iz + b_iz + h @ w_hz + b_hz)
        n = jnp.tanh(x_t @ w_in + b_in + r * (h @ w_hn + b_hn))
        h = (1.0 - z) * n + z * h
        outs.append(h @ p["w_dec"] + p["b_dec"])
    out = jnp.stack(outs, axis=1)
    return jnp.cumsum(out, axis=1)


if __name__ == "__main__":
    key = jax.random.PRNGKey(0)
    bs, T, D = 2, 10, 32          # batch, waypoints (module default 10), input_dim
    k_x, k_m, k_p = jax.random.split(key, 3)
    x = jax.random.normal(k_x, (bs, T, D), jnp.float32)
    measurements = jax.random.normal(k_m, (bs, 10), jnp.float32)
    params = init_params(k_p, D)

    out = gru_waypoints_predictor(x, measurements, params)
    out = jax.block_until_ready(out)

    ref = reference(x, measurements, params)
    assert out.shape == (bs, T, 2), out.shape
    assert bool(jnp.all(jnp.isfinite(out)))
    # bf16 MXU operands (input + recurrent matmuls) vs. the f32 reference over a
    # T=10 recurrence -> a few e-2 of drift is expected and acceptable here.
    err = float(jnp.max(jnp.abs(out - ref)))
    assert bool(jnp.allclose(out, ref, rtol=5e-2, atol=5e-2)), err
    print("KERNEL_OK")
</pallas_src>

<mosaic_0001>
module attributes {stable_mosaic.version = 11 : i64} {
  func.func @gru_waypoints_kernel(%arg0: memref<160x32xbf16, #tpu.memory_space<vmem>>, %arg1: memref<16x1xf32, #tpu.memory_space<vmem>>, %arg2: memref<96x192xbf16, #tpu.memory_space<vmem>>, %arg3: memref<64x2xf32, #tpu.memory_space<vmem>>, %arg4: memref<8x192xf32, #tpu.memory_space<vmem>>, %arg5: memref<160x2xf32, #tpu.memory_space<vmem>>, %arg6: memref<160x192xf32, #tpu.memory_space<vmem>>, %arg7: memref<160x64xf32, #tpu.memory_space<vmem>>) attributes {dimension_semantics = [], scalar_prefetch = 0 : i64, scratch_operands = 2 : i64, tpu.core_type = #tpu.core_type<tc>} {
    %c0 = arith.constant 0 : index
    %c0_0 = arith.constant 0 : index
    %0 = vector.load %arg4[%c0, %c0_0] : memref<8x192xf32, #tpu.memory_space<vmem>>, vector<1x192xf32>
    %c1 = arith.constant 1 : index
    %c0_1 = arith.constant 0 : index
    %1 = vector.load %arg4[%c1, %c0_1] : memref<8x192xf32, #tpu.memory_space<vmem>>, vector<1x64xf32>
    %c1_2 = arith.constant 1 : index
    %c64 = arith.constant 64 : index
    %2 = vector.load %arg4[%c1_2, %c64] : memref<8x192xf32, #tpu.memory_space<vmem>>, vector<1x64xf32>
    %c1_3 = arith.constant 1 : index
    %c128 = arith.constant 128 : index
    %3 = vector.load %arg4[%c1_3, %c128] : memref<8x192xf32, #tpu.memory_space<vmem>>, vector<1x64xf32>
    %c2 = arith.constant 2 : index
    %c0_4 = arith.constant 0 : index
    %4 = vector.load %arg4[%c2, %c0_4] : memref<8x192xf32, #tpu.memory_space<vmem>>, vector<1x2xf32>
    %c0_5 = arith.constant 0 : index
    %c0_6 = arith.constant 0 : index
    %5 = vector.load %arg2[%c0_5, %c0_6] : memref<96x192xbf16, #tpu.memory_space<vmem>>, vector<32x192xbf16>
    %c32 = arith.constant 32 : index
    %c0_7 = arith.constant 0 : index
    %6 = vector.load %arg2[%c32, %c0_7] : memref<96x192xbf16, #tpu.memory_space<vmem>>, vector<64x192xbf16>
    %c0_8 = arith.constant 0 : index
    %c0_9 = arith.constant 0 : index
    %7 = vector.load %arg1[%c0_8, %c0_9] : memref<16x1xf32, #tpu.memory_space<vmem>>, vector<16x1xf32>
    %8 = vector.broadcast %7 : vector<16x1xf32> to vector<16x64xf32>
    %9 = vector.broadcast %2 : vector<1x64xf32> to vector<16x64xf32>
    %10 = arith.mulf %8, %9 : vector<16x64xf32>
    %11 = vector.broadcast %3 : vector<1x64xf32> to vector<16x64xf32>
    %12 = arith.addf %10, %11 : vector<16x64xf32>
    %c0_10 = arith.constant 0 : index
    %c0_11 = arith.constant 0 : index
    %13 = vector.load %arg0[%c0_10, %c0_11] : memref<160x32xbf16, #tpu.memory_space<vmem>>, vector<160x32xbf16>
    %cst = arith.constant dense<0.000000e+00> : vector<160x192xf32>
    %14 = tpu.matmul %13, %5, %cst {dimension_numbers = #tpu.dot_dimension_numbers<[1], [0], [0], [1], [0, 0, 1, 1], [], []>} : vector<160x32xbf16>, vector<32x192xbf16>, vector<160x192xf32> -> vector<160x192xf32>
    %15 = vector.broadcast %0 : vector<1x192xf32> to vector<160x192xf32>
    %16 = arith.addf %14, %15 : vector<160x192xf32>
    %c0_12 = arith.constant 0 : index
    %c0_13 = arith.constant 0 : index
    %17 = vector.load %arg6[%c0_12, %c0_13] : memref<160x192xf32, #tpu.memory_space<vmem>>, vector<160x192xf32>
    tpu.vector_store %arg6[%c0_12, %c0_13], %16 {strides = array<i32>} : memref<160x192xf32, #tpu.memory_space<vmem>>, vector<160x192xf32>,
    %c0_14 = arith.constant 0 : index
    %c0_15 = arith.constant 0 : index
    %18 = vector.load %arg6[%c0_14, %c0_15] : memref<160x192xf32, #tpu.memory_space<vmem>>, vector<16x192xf32>
    %19 = arith.truncf %12 : vector<16x64xf32> to vector<16x64xbf16>
    %cst_16 = arith.constant dense<0.000000e+00> : vector<16x192xf32>
    %20 = tpu.matmul %19, %6, %cst_16 {dimension_numbers = #tpu.dot_dimension_numbers<[1], [0], [0], [1], [0, 0, 1, 1], [], []>} : vector<16x64xbf16>, vector<64x192xbf16>, vector<16x192xf32> -> vector<16x192xf32>
    %21 = vector.extract_strided_slice %18 {offsets = [0, 0], sizes = [16, 128], strides = [1, 1]} : vector<16x192xf32> to vector<16x128xf32>
    %22 = vector.extract_strided_slice %20 {offsets = [0, 0], sizes = [16, 128], strides = [1, 1]} : vector<16x192xf32> to vector<16x128xf32>
    %23 = arith.addf %21, %22 : vector<16x128xf32>
    %24 = arith.negf %23 : vector<16x128xf32>
    %25 = math.exp %24 : vector<16x128xf32>
    %cst_17 = arith.constant 1.000000e+00 : f32
    %26 = vector.broadcast %cst_17 : f32 to vector<16x128xf32>
    %27 = arith.addf %26, %25 : vector<16x128xf32>
    %28 = arith.divf %26, %27 : vector<16x128xf32>
    %29 = vector.extract_strided_slice %28 {offsets = [0, 0], sizes = [16, 64], strides = [1, 1]} : vector<16x128xf32> to vector<16x64xf32>
    %30 = vector.extract_strided_slice %28 {offsets = [0, 64], sizes = [16, 64], strides = [1, 1]} : vector<16x128xf32> to vector<16x64xf32>
    %31 = vector.extract_strided_slice %18 {offsets = [0, 128], sizes = [16, 64], strides = [1, 1]} : vector<16x192xf32> to vector<16x64xf32>
    %32 = vector.extract_strided_slice %20 {offsets = [0, 128], sizes = [16, 64], strides = [1, 1]} : vector<16x192xf32> to vector<16x64xf32>
    %33 = vector.broadcast %1 : vector<1x64xf32> to vector<16x64xf32>
    %34 = arith.addf %32, %33 : vector<16x64xf32>
    %35 = arith.mulf %29, %34 : vector<16x64xf32>
    %36 = arith.addf %31, %35 : vector<16x64xf32>
    %37 = math.tanh %36 : vector<16x64xf32>
    %cst_18 = arith.constant 1.000000e+00 : f32
    %38 = vector.broadcast %cst_18 : f32 to vector<16x64xf32>
    %39 = arith.subf %38, %30 : vector<16x64xf32>
    %40 = arith.mulf %39, %37 : vector<16x64xf32>
    %41 = arith.mulf %30, %12 : vector<16x64xf32>
    %42 = arith.addf %40, %41 : vector<16x64xf32>
    %c0_19 = arith.constant 0 : index
    %c0_20 = arith.constant 0 : index
    %43 = vector.load %arg7[%c0_19, %c0_20] : memref<160x64xf32, #tpu.memory_space<vmem>>, vector<16x64xf32>
    tpu.vector_store %arg7[%c0_19, %c0_20], %42 {strides = array<i32>} : memref<160x64xf32, #tpu.memory_space<vmem>>, vector<16x64xf32>,
    %c16 = arith.constant 16 : index
    %c0_21 = arith.constant 0 : index
    %44 = vector.load %arg6[%c16, %c0_21] : memref<160x192xf32, #tpu.memory_space<vmem>>, vector<16x192xf32>
    %45 = arith.truncf %42 : vector<16x64xf32> to vector<16x64xbf16>
    %cst_22 = arith.constant dense<0.000000e+00> : vector<16x192xf32>
    %46 = tpu.matmul %45, %6, %cst_22 {dimension_numbers = #tpu.dot_dimension_numbers<[1], [0], [0], [1], [0, 0, 1, 1], [], []>} : vector<16x64xbf16>, vector<64x192xbf16>, vector<16x192xf32> -> vector<16x192xf32>
    %47 = vector.extract_strided_slice %44 {offsets = [0, 0], sizes = [16, 128], strides = [1, 1]} : vector<16x192xf32> to vector<16x128xf32>
    %48 = vector.extract_strided_slice %46 {offsets = [0, 0], sizes = [16, 128], strides = [1, 1]} : vector<16x192xf32> to vector<16x128xf32>
    %49 = arith.addf %47, %48 : vector<16x128xf32>
    %50 = arith.negf %49 : vector<16x128xf32>
    %51 = math.exp %50 : vector<16x128xf32>
    %cst_23 = arith.constant 1.000000e+00 : f32
    %52 = vector.broadcast %cst_23 : f32 to vector<16x128xf32>
    %53 = arith.addf %52, %51 : vector<16x128xf32>
    %54 = arith.divf %52, %53 : vector<16x128xf32>
    %55 = vector.extract_strided_slice %54 {offsets = [0, 0], sizes = [16, 64], strides = [1, 1]} : vector<16x128xf32> to vector<16x64xf32>
    %56 = vector.extract_strided_slice %54 {offsets = [0, 64], sizes = [16, 64], strides = [1, 1]} : vector<16x128xf32> to vector<16x64xf32>
    %57 = vector.extract_strided_slice %44 {offsets = [0, 128], sizes = [16, 64], strides = [1, 1]} : vector<16x192xf32> to vector<16x64xf32>
    %58 = vector.extract_strided_slice %46 {offsets = [0, 128], sizes = [16, 64], strides = [1, 1]} : vector<16x192xf32> to vector<16x64xf32>
    %59 = vector.broadcast %1 : vector<1x64xf32> to vector<16x64xf32>
    %60 = arith.addf %58, %59 : vector<16x64xf32>
    %61 = arith.mulf %55, %60 : vector<16x64xf32>
    %62 = arith.addf %57, %61 : vector<16x64xf32>
    %63 = math.tanh %62 : vector<16x64xf32>
    %cst_24 = arith.constant 1.000000e+00 : f32
    %64 = vector.broadcast %cst_24 : f32 to vector<16x64xf32>
    %65 = arith.subf %64, %56 : vector<16x64xf32>
    %66 = arith.mulf %65, %63 : vector<16x64xf32>
    %67 = arith.mulf %56, %42 : vector<16x64xf32>
    %68 = arith.addf %66, %67 : vector<16x64xf32>
    %c16_25 = arith.constant 16 : index
    %c0_26 = arith.constant 0 : index
    %69 = vector.load %arg7[%c16_25, %c0_26] : memref<160x64xf32, #tpu.memory_space<vmem>>, vector<16x64xf32>
    tpu.vector_store %arg7[%c16_25, %c0_26], %68 {strides = array<i32>} : memref<160x64xf32, #tpu.memory_space<vmem>>, vector<16x64xf32>,
    %c32_27 = arith.constant 32 : index
    %c0_28 = arith.constant 0 : index
    %70 = vector.load %arg6[%c32_27, %c0_28] : memref<160x192xf32, #tpu.memory_space<vmem>>, vector<16x192xf32>
    %71 = arith.truncf %68 : vector<16x64xf32> to vector<16x64xbf16>
    %cst_29 = arith.constant dense<0.000000e+00> : vector<16x192xf32>
    %72 = tpu.matmul %71, %6, %cst_29 {dimension_numbers = #tpu.dot_dimension_numbers<[1], [0], [0], [1], [0, 0, 1, 1], [], []>} : vector<16x64xbf16>, vector<64x192xbf16>, vector<16x192xf32> -> vector<16x192xf32>
    %73 = vector.extract_strided_slice %70 {offsets = [0, 0], sizes = [16, 128], strides = [1, 1]} : vector<16x192xf32> to vector<16x128xf32>
    %74 = vector.extract_strided_slice %72 {offsets = [0, 0], sizes = [16, 128], strides = [1, 1]} : vector<16x192xf32> to vector<16x128xf32>
    %75 = arith.addf %73, %74 : vector<16x128xf32>
    %76 = arith.negf %75 : vector<16x128xf32>
    %77 = math.exp %76 : vector<16x128xf32>
    %cst_30 = arith.constant 1.000000e+00 : f32
    %78 = vector.broadcast %cst_30 : f32 to vector<16x128xf32>
    %79 = arith.addf %78, %77 : vector<16x128xf32>
    %80 = arith.divf %78, %79 : vector<16x128xf32>
    %81 = vector.extract_strided_slice %80 {offsets = [0, 0], sizes = [16, 64], strides = [1, 1]} : vector<16x128xf32> to vector<16x64xf32>
    %82 = vector.extract_strided_slice %80 {offsets = [0, 64], sizes = [16, 64], strides = [1, 1]} : vector<16x128xf32> to vector<16x64xf32>
    %83 = vector.extract_strided_slice %70 {offsets = [0, 128], sizes = [16, 64], strides = [1, 1]} : vector<16x192xf32> to vector<16x64xf32>
    %84 = vector.extract_strided_slice %72 {offsets = [0, 128], sizes = [16, 64], strides = [1, 1]} : vector<16x192xf32> to vector<16x64xf32>
    %85 = vector.broadcast %1 : vector<1x64xf32> to vector<16x64xf32>
    %86 = arith.addf %84, %85 : vector<16x64xf32>
    %87 = arith.mulf %81, %86 : vector<16x64xf32>
    %88 = arith.addf %83, %87 : vector<16x64xf32>
    %89 = math.tanh %88 : vector<16x64xf32>
    %cst_31 = arith.constant 1.000000e+00 : f32
    %90 = vector.broadcast %cst_31 : f32 to vector<16x64xf32>
    %91 = arith.subf %90, %82 : vector<16x64xf32>
    %92 = arith.mulf %91, %89 : vector<16x64xf32>
    %93 = arith.mulf %82, %68 : vector<16x64xf32>
    %94 = arith.addf %92, %93 : vector<16x64xf32>
    %c32_32 = arith.constant 32 : index
    %c0_33 = arith.constant 0 : index
    %95 = vector.load %arg7[%c32_32, %c0_33] : memref<160x64xf32, #tpu.memory_space<vmem>>, vector<16x64xf32>
    tpu.vector_store %arg7[%c32_32, %c0_33], %94 {strides = array<i32>} : memref<160x64xf32, #tpu.memory_space<vmem>>, vector<16x64xf32>,
    %c48 = arith.constant 48 : index
    %c0_34 = arith.constant 0 : index
    %96 = vector.load %arg6[%c48, %c0_34] : memref<160x192xf32, #tpu.memory_space<vmem>>, vector<16x192xf32>
    %97 = arith.truncf %94 : vector<16x64xf32> to vector<16x64xbf16>
    %cst_35 = arith.constant dense<0.000000e+00> : vector<16x192xf32>
    %98 = tpu.matmul %97, %6, %cst_35 {dimension_numbers = #tpu.dot_dimension_numbers<[1], [0], [0], [1], [0, 0, 1, 1], [], []>} : vector<16x64xbf16>, vector<64x192xbf16>, vector<16x192xf32> -> vector<16x192xf32>
    %99 = vector.extract_strided_slice %96 {offsets = [0, 0], sizes = [16, 128], strides = [1, 1]} : vector<16x192xf32> to vector<16x128xf32>
    %100 = vector.extract_strided_slice %98 {offsets = [0, 0], sizes = [16, 128], strides = [1, 1]} : vector<16x192xf32> to vector<16x128xf32>
    %101 = arith.addf %99, %100 : vector<16x128xf32>
    %102 = arith.negf %101 : vector<16x128xf32>
    %103 = math.exp %102 : vector<16x128xf32>
    %cst_36 = arith.constant 1.000000e+00 : f32
    %104 = vector.broadcast %cst_36 : f32 to vector<16x128xf32>
    %105 = arith.addf %104, %103 : vector<16x128xf32>
    %106 = arith.divf %104, %105 : vector<16x128xf32>
    %107 = vector.extract_strided_slice %106 {offsets = [0, 0], sizes = [16, 64], strides = [1, 1]} : vector<16x128xf32> to vector<16x64xf32>
    %108 = vector.extract_strided_slice %106 {offsets = [0, 64], sizes = [16, 64], strides = [1, 1]} : vector<16x128xf32> to vector<16x64xf32>
    %109 = vector.extract_strided_slice %96 {offsets = [0, 128], sizes = [16, 64], strides = [1, 1]} : vector<16x192xf32> to vector<16x64xf32>
    %110 = vector.extract_strided_slice %98 {offsets = [0, 128], sizes = [16, 64], strides = [1, 1]} : vector<16x192xf32> to vector<16x64xf32>
    %111 = vector.broadcast %1 : vector<1x64xf32> to vector<16x64xf32>
    %112 = arith.addf %110, %111 : vector<16x64xf32>
    %113 = arith.mulf %107, %112 : vector<16x64xf32>
    %114 = arith.addf %109, %113 : vector<16x64xf32>
    %115 = math.tanh %114 : vector<16x64xf32>
    %cst_37 = arith.constant 1.000000e+00 : f32
    %116 = vector.broadcast %cst_37 : f32 to vector<16x64xf32>
    %117 = arith.subf %116, %108 : vector<16x64xf32>
    %118 = arith.mulf %117, %115 : vector<16x64xf32>
    %119 = arith.mulf %108, %94 : vector<16x64xf32>
    %120 = arith.addf %118, %119 : vector<16x64xf32>
    %c48_38 = arith.constant 48 : index
    %c0_39 = arith.constant 0 : index
    %121 = vector.load %arg7[%c48_38, %c0_39] : memref<160x64xf32, #tpu.memory_space<vmem>>, vector<16x64xf32>
    tpu.vector_store %arg7[%c48_38, %c0_39], %120 {strides = array<i32>} : memref<160x64xf32, #tpu.memory_space<vmem>>, vector<16x64xf32>,
    %c64_40 = arith.constant 64 : index
    %c0_41 = arith.constant 0 : index
    %122 = vector.load %arg6[%c64_40, %c0_41] : memref<160x192xf32, #tpu.memory_space<vmem>>, vector<16x192xf32>
    %123 = arith.truncf %120 : vector<16x64xf32> to vector<16x64xbf16>
    %cst_42 = arith.constant dense<0.000000e+00> : vector<16x192xf32>
    %124 = tpu.matmul %123, %6, %cst_42 {dimension_numbers = #tpu.dot_dimension_numbers<[1], [0], [0], [1], [0, 0, 1, 1], [], []>} : vector<16x64xbf16>, vector<64x192xbf16>, vector<16x192xf32> -> vector<16x192xf32>
    %125 = vector.extract_strided_slice %122 {offsets = [0, 0], sizes = [16, 128], strides = [1, 1]} : vector<16x192xf32> to vector<16x128xf32>
    %126 = vector.extract_strided_slice %124 {offsets = [0, 0], sizes = [16, 128], strides = [1, 1]} : vector<16x192xf32> to vector<16x128xf32>
    %127 = arith.addf %125, %126 : vector<16x128xf32>
    %128 = arith.negf %127 : vector<16x128xf32>
    %129 = math.exp %128 : vector<16x128xf32>
    %cst_43 = arith.constant 1.000000e+00 : f32
    %130 = vector.broadcast %cst_43 : f32 to vector<16x128xf32>
    %131 = arith.addf %130, %129 : vector<16x128xf32>
    %132 = arith.divf %130, %131 : vector<16x128xf32>
    %133 = vector.extract_strided_slice %132 {offsets = [0, 0], sizes = [16, 64], strides = [1, 1]} : vector<16x128xf32> to vector<16x64xf32>
    %134 = vector.extract_strided_slice %132 {offsets = [0, 64], sizes = [16, 64], strides = [1, 1]} : vector<16x128xf32> to vector<16x64xf32>
    %135 = vector.extract_strided_slice %122 {offsets = [0, 128], sizes = [16, 64], strides = [1, 1]} : vector<16x192xf32> to vector<16x64xf32>
    %136 = vector.extract_strided_slice %124 {offsets = [0, 128], sizes = [16, 64], strides = [1, 1]} : vector<16x192xf32> to vector<16x64xf32>
    %137 = vector.broadcast %1 : vector<1x64xf32> to vector<16x64xf32>
    %138 = arith.addf %136, %137 : vector<16x64xf32>
    %139 = arith.mulf %133, %138 : vector<16x64xf32>
    %140 = arith.addf %135, %139 : vector<16x64xf32>
    %141 = math.tanh %140 : vector<16x64xf32>
    %cst_44 = arith.constant 1.000000e+00 : f32
    %142 = vector.broadcast %cst_44 : f32 to vector<16x64xf32>
    %143 = arith.subf %142, %134 : vector<16x64xf32>
    %144 = arith.mulf %143, %141 : vector<16x64xf32>
    %145 = arith.mulf %134, %120 : vector<16x64xf32>
    %146 = arith.addf %144, %145 : vector<16x64xf32>
    %c64_45 = arith.constant 64 : index
    %c0_46 = arith.constant 0 : index
    %147 = vector.load %arg7[%c64_45, %c0_46] : memref<160x64xf32, #tpu.memory_space<vmem>>, vector<16x64xf32>
    tpu.vector_store %arg7[%c64_45, %c0_46], %146 {strides = array<i32>} : memref<160x64xf32, #tpu.memory_space<vmem>>, vector<16x64xf32>,
    %c80 = arith.constant 80 : index
    %c0_47 = arith.constant 0 : index
    %148 = vector.load %arg6[%c80, %c0_47] : memref<160x192xf32, #tpu.memory_space<vmem>>, vector<16x192xf32>
    %149 = arith.truncf %146 : vector<16x64xf32> to vector<16x64xbf16>
    %cst_48 = arith.constant dense<0.000000e+00> : vector<16x192xf32>
    %150 = tpu.matmul %149, %6, %cst_48 {dimension_numbers = #tpu.dot_dimension_numbers<[1], [0], [0], [1], [0, 0, 1, 1], [], []>} : vector<16x64xbf16>, vector<64x192xbf16>, vector<16x192xf32> -> vector<16x192xf32>
    %151 = vector.extract_strided_slice %148 {offsets = [0, 0], sizes = [16, 128], strides = [1, 1]} : vector<16x192xf32> to vector<16x128xf32>
    %152 = vector.extract_strided_slice %150 {offsets = [0, 0], sizes = [16, 128], strides = [1, 1]} : vector<16x192xf32> to vector<16x128xf32>
    %153 = arith.addf %151, %152 : vector<16x128xf32>
    %154 = arith.negf %153 : vector<16x128xf32>
    %155 = math.exp %154 : vector<16x128xf32>
    %cst_49 = arith.constant 1.000000e+00 : f32
    %156 = vector.broadcast %cst_49 : f32 to vector<16x128xf32>
    %157 = arith.addf %156, %155 : vector<16x128xf32>
    %158 = arith.divf %156, %157 : vector<16x128xf32>
    %159 = vector.extract_strided_slice %158 {offsets = [0, 0], sizes = [16, 64], strides = [1, 1]} : vector<16x128xf32> to vector<16x64xf32>
    %160 = vector.extract_strided_slice %158 {offsets = [0, 64], sizes = [16, 64], strides = [1, 1]} : vector<16x128xf32> to vector<16x64xf32>
    %161 = vector.extract_strided_slice %148 {offsets = [0, 128], sizes = [16, 64], strides = [1, 1]} : vector<16x192xf32> to vector<16x64xf32>
    %162 = vector.extract_strided_slice %150 {offsets = [0, 128], sizes = [16, 64], strides = [1, 1]} : vector<16x192xf32> to vector<16x64xf32>
    %163 = vector.broadcast %1 : vector<1x64xf32> to vector<16x64xf32>
    %164 = arith.addf %162, %163 : vector<16x64xf32>
    %165 = arith.mulf %159, %164 : vector<16x64xf32>
    %166 = arith.addf %161, %165 : vector<16x64xf32>
    %167 = math.tanh %166 : vector<16x64xf32>
    %cst_50 = arith.constant 1.000000e+00 : f32
    %168 = vector.broadcast %cst_50 : f32 to vector<16x64xf32>
    %169 = arith.subf %168, %160 : vector<16x64xf32>
    %170 = arith.mulf %169, %167 : vector<16x64xf32>
    %171 = arith.mulf %160, %146 : vector<16x64xf32>
    %172 = arith.addf %170, %171 : vector<16x64xf32>
    %c80_51 = arith.constant 80 : index
    %c0_52 = arith.constant 0 : index
    %173 = vector.load %arg7[%c80_51, %c0_52] : memref<160x64xf32, #tpu.memory_space<vmem>>, vector<16x64xf32>
    tpu.vector_store %arg7[%c80_51, %c0_52], %172 {strides = array<i32>} : memref<160x64xf32, #tpu.memory_space<vmem>>, vector<16x64xf32>,
    %c96 = arith.constant 96 : index
    %c0_53 = arith.constant 0 : index
    %174 = vector.load %arg6[%c96, %c0_53] : memref<160x192xf32, #tpu.memory_space<vmem>>, vector<16x192xf32>
    %175 = arith.truncf %172 : vector<16x64xf32> to vector<16x64xbf16>
    %cst_54 = arith.constant dense<0.000000e+00> : vector<16x192xf32>
    %176 = tpu.matmul %175, %6, %cst_54 {dimension_numbers = #tpu.dot_dimension_numbers<[1], [0], [0], [1], [0, 0, 1, 1], [], []>} : vector<16x64xbf16>, vector<64x192xbf16>, vector<16x192xf32> -> vector<16x192xf32>
    %177 = vector.extract_strided_slice %174 {offsets = [0, 0], sizes = [16, 128], strides = [1, 1]} : vector<16x192xf32> to vector<16x128xf32>
    %178 = vector.extract_strided_slice %176 {offsets = [0, 0], sizes = [16, 128], strides = [1, 1]} : vector<16x192xf32> to vector<16x128xf32>
    %179 = arith.addf %177, %178 : vector<16x128xf32>
    %180 = arith.negf %179 : vector<16x128xf32>
    %181 = math.exp %180 : vector<16x128xf32>
    %cst_55 = arith.constant 1.000000e+00 : f32
    %182 = vector.broadcast %cst_55 : f32 to vector<16x128xf32>
    %183 = arith.addf %182, %181 : vector<16x128xf32>
    %184 = arith.divf %182, %183 : vector<16x128xf32>
    %185 = vector.extract_strided_slice %184 {offsets = [0, 0], sizes = [16, 64], strides = [1, 1]} : vector<16x128xf32> to vector<16x64xf32>
    %186 = vector.extract_strided_slice %184 {offsets = [0, 64], sizes = [16, 64], strides = [1, 1]} : vector<16x128xf32> to vector<16x64xf32>
    %187 = vector.extract_strided_slice %174 {offsets = [0, 128], sizes = [16, 64], strides = [1, 1]} : vector<16x192xf32> to vector<16x64xf32>
    %188 = vector.extract_strided_slice %176 {offsets = [0, 128], sizes = [16, 64], strides = [1, 1]} : vector<16x192xf32> to vector<16x64xf32>
    %189 = vector.broadcast %1 : vector<1x64xf32> to vector<16x64xf32>
    %190 = arith.addf %188, %189 : vector<16x64xf32>
    %191 = arith.mulf %185, %190 : vector<16x64xf32>
    %192 = arith.addf %187, %191 : vector<16x64xf32>
    %193 = math.tanh %192 : vector<16x64xf32>
    %cst_56 = arith.constant 1.000000e+00 : f32
    %194 = vector.broadcast %cst_56 : f32 to vector<16x64xf32>
    %195 = arith.subf %194, %186 : vector<16x64xf32>
    %196 = arith.mulf %195, %193 : vector<16x64xf32>
    %197 = arith.mulf %186, %172 : vector<16x64xf32>
    %198 = arith.addf %196, %197 : vector<16x64xf32>
    %c96_57 = arith.constant 96 : index
    %c0_58 = arith.constant 0 : index
    %199 = vector.load %arg7[%c96_57, %c0_58] : memref<160x64xf32, #tpu.memory_space<vmem>>, vector<16x64xf32>
    tpu.vector_store %arg7[%c96_57, %c0_58], %198 {strides = array<i32>} : memref<160x64xf32, #tpu.memory_space<vmem>>, vector<16x64xf32>,
    %c112 = arith.constant 112 : index
    %c0_59 = arith.constant 0 : index
    %200 = vector.load %arg6[%c112, %c0_59] : memref<160x192xf32, #tpu.memory_space<vmem>>, vector<16x192xf32>
    %201 = arith.truncf %198 : vector<16x64xf32> to vector<16x64xbf16>
    %cst_60 = arith.constant dense<0.000000e+00> : vector<16x192xf32>
    %202 = tpu.matmul %201, %6, %cst_60 {dimension_numbers = #tpu.dot_dimension_numbers<[1], [0], [0], [1], [0, 0, 1, 1], [], []>} : vector<16x64xbf16>, vector<64x192xbf16>, vector<16x192xf32> -> vector<16x192xf32>
    %203 = vector.extract_strided_slice %200 {offsets = [0, 0], sizes = [16, 128], strides = [1, 1]} : vector<16x192xf32> to vector<16x128xf32>
    %204 = vector.extract_strided_slice %202 {offsets = [0, 0], sizes = [16, 128], strides = [1, 1]} : vector<16x192xf32> to vector<16x128xf32>
    %205 = arith.addf %203, %204 : vector<16x128xf32>
    %206 = arith.negf %205 : vector<16x128xf32>
    %207 = math.exp %206 : vector<16x128xf32>
    %cst_61 = arith.constant 1.000000e+00 : f32
    %208 = vector.broadcast %cst_61 : f32 to vector<16x128xf32>
    %209 = arith.addf %208, %207 : vector<16x128xf32>
    %210 = arith.divf %208, %209 : vector<16x128xf32>
    %211 = vector.extract_strided_slice %210 {offsets = [0, 0], sizes = [16, 64], strides = [1, 1]} : vector<16x128xf32> to vector<16x64xf32>
    %212 = vector.extract_strided_slice %210 {offsets = [0, 64], sizes = [16, 64], strides = [1, 1]} : vector<16x128xf32> to vector<16x64xf32>
    %213 = vector.extract_strided_slice %200 {offsets = [0, 128], sizes = [16, 64], strides = [1, 1]} : vector<16x192xf32> to vector<16x64xf32>
    %214 = vector.extract_strided_slice %202 {offsets = [0, 128], sizes = [16, 64], strides = [1, 1]} : vector<16x192xf32> to vector<16x64xf32>
    %215 = vector.broadcast %1 : vector<1x64xf32> to vector<16x64xf32>
    %216 = arith.addf %214, %215 : vector<16x64xf32>
    %217 = arith.mulf %211, %216 : vector<16x64xf32>
    %218 = arith.addf %213, %217 : vector<16x64xf32>
    %219 = math.tanh %218 : vector<16x64xf32>
    %cst_62 = arith.constant 1.000000e+00 : f32
    %220 = vector.broadcast %cst_62 : f32 to vector<16x64xf32>
    %221 = arith.subf %220, %212 : vector<16x64xf32>
    %222 = arith.mulf %221, %219 : vector<16x64xf32>
    %223 = arith.mulf %212, %198 : vector<16x64xf32>
    %224 = arith.addf %222, %223 : vector<16x64xf32>
    %c112_63 = arith.constant 112 : index
    %c0_64 = arith.constant 0 : index
    %225 = vector.load %arg7[%c112_63, %c0_64] : memref<160x64xf32, #tpu.memory_space<vmem>>, vector<16x64xf32>
    tpu.vector_store %arg7[%c112_63, %c0_64], %224 {strides = array<i32>} : memref<160x64xf32, #tpu.memory_space<vmem>>, vector<16x64xf32>,
    %c128_65 = arith.constant 128 : index
    %c0_66 = arith.constant 0 : index
    %226 = vector.load %arg6[%c128_65, %c0_66] : memref<160x192xf32, #tpu.memory_space<vmem>>, vector<16x192xf32>
    %227 = arith.truncf %224 : vector<16x64xf32> to vector<16x64xbf16>
    %cst_67 = arith.constant dense<0.000000e+00> : vector<16x192xf32>
    %228 = tpu.matmul %227, %6, %cst_67 {dimension_numbers = #tpu.dot_dimension_numbers<[1], [0], [0], [1], [0, 0, 1, 1], [], []>} : vector<16x64xbf16>, vector<64x192xbf16>, vector<16x192xf32> -> vector<16x192xf32>
    %229 = vector.extract_strided_slice %226 {offsets = [0, 0], sizes = [16, 128], strides = [1, 1]} : vector<16x192xf32> to vector<16x128xf32>
    %230 = vector.extract_strided_slice %228 {offsets = [0, 0], sizes = [16, 128], strides = [1, 1]} : vector<16x192xf32> to vector<16x128xf32>
    %231 = arith.addf %229, %230 : vector<16x128xf32>
    %232 = arith.negf %231 : vector<16x128xf32>
    %233 = math.exp %232 : vector<16x128xf32>
    %cst_68 = arith.constant 1.000000e+00 : f32
    %234 = vector.broadcast %cst_68 : f32 to vector<16x128xf32>
    %235 = arith.addf %234, %233 : vector<16x128xf32>
    %236 = arith.divf %234, %235 : vector<16x128xf32>
    %237 = vector.extract_strided_slice %236 {offsets = [0, 0], sizes = [16, 64], strides = [1, 1]} : vector<16x128xf32> to vector<16x64xf32>
    %238 = vector.extract_strided_slice %236 {offsets = [0, 64], sizes = [16, 64], strides = [1, 1]} : vector<16x128xf32> to vector<16x64xf32>
    %239 = vector.extract_strided_slice %226 {offsets = [0, 128], sizes = [16, 64], strides = [1, 1]} : vector<16x192xf32> to vector<16x64xf32>
    %240 = vector.extract_strided_slice %228 {offsets = [0, 128], sizes = [16, 64], strides = [1, 1]} : vector<16x192xf32> to vector<16x64xf32>
    %241 = vector.broadcast %1 : vector<1x64xf32> to vector<16x64xf32>
    %242 = arith.addf %240, %241 : vector<16x64xf32>
    %243 = arith.mulf %237, %242 : vector<16x64xf32>
    %244 = arith.addf %239, %243 : vector<16x64xf32>
    %245 = math.tanh %244 : vector<16x64xf32>
    %cst_69 = arith.constant 1.000000e+00 : f32
    %246 = vector.broadcast %cst_69 : f32 to vector<16x64xf32>
    %247 = arith.subf %246, %238 : vector<16x64xf32>
    %248 = arith.mulf %247, %245 : vector<16x64xf32>
    %249 = arith.mulf %238, %224 : vector<16x64xf32>
    %250 = arith.addf %248, %249 : vector<16x64xf32>
    %c128_70 = arith.constant 128 : index
    %c0_71 = arith.constant 0 : index
    %251 = vector.load %arg7[%c128_70, %c0_71] : memref<160x64xf32, #tpu.memory_space<vmem>>, vector<16x64xf32>
    tpu.vector_store %arg7[%c128_70, %c0_71], %250 {strides = array<i32>} : memref<160x64xf32, #tpu.memory_space<vmem>>, vector<16x64xf32>,
    %c144 = arith.constant 144 : index
    %c0_72 = arith.constant 0 : index
    %252 = vector.load %arg6[%c144, %c0_72] : memref<160x192xf32, #tpu.memory_space<vmem>>, vector<16x192xf32>
    %253 = arith.truncf %250 : vector<16x64xf32> to vector<16x64xbf16>
    %cst_73 = arith.constant dense<0.000000e+00> : vector<16x192xf32>
    %254 = tpu.matmul %253, %6, %cst_73 {dimension_numbers = #tpu.dot_dimension_numbers<[1], [0], [0], [1], [0, 0, 1, 1], [], []>} : vector<16x64xbf16>, vector<64x192xbf16>, vector<16x192xf32> -> vector<16x192xf32>
    %255 = vector.extract_strided_slice %252 {offsets = [0, 0], sizes = [16, 128], strides = [1, 1]} : vector<16x192xf32> to vector<16x128xf32>
    %256 = vector.extract_strided_slice %254 {offsets = [0, 0], sizes = [16, 128], strides = [1, 1]} : vector<16x192xf32> to vector<16x128xf32>
    %257 = arith.addf %255, %256 : vector<16x128xf32>
    %258 = arith.negf %257 : vector<16x128xf32>
    %259 = math.exp %258 : vector<16x128xf32>
    %cst_74 = arith.constant 1.000000e+00 : f32
    %260 = vector.broadcast %cst_74 : f32 to vector<16x128xf32>
    %261 = arith.addf %260, %259 : vector<16x128xf32>
    %262 = arith.divf %260, %261 : vector<16x128xf32>
    %263 = vector.extract_strided_slice %262 {offsets = [0, 0], sizes = [16, 64], strides = [1, 1]} : vector<16x128xf32> to vector<16x64xf32>
    %264 = vector.extract_strided_slice %262 {offsets = [0, 64], sizes = [16, 64], strides = [1, 1]} : vector<16x128xf32> to vector<16x64xf32>
    %265 = vector.extract_strided_slice %252 {offsets = [0, 128], sizes = [16, 64], strides = [1, 1]} : vector<16x192xf32> to vector<16x64xf32>
    %266 = vector.extract_strided_slice %254 {offsets = [0, 128], sizes = [16, 64], strides = [1, 1]} : vector<16x192xf32> to vector<16x64xf32>
    %267 = vector.broadcast %1 : vector<1x64xf32> to vector<16x64xf32>
    %268 = arith.addf %266, %267 : vector<16x64xf32>
    %269 = arith.mulf %263, %268 : vector<16x64xf32>
    %270 = arith.addf %265, %269 : vector<16x64xf32>
    %271 = math.tanh %270 : vector<16x64xf32>
    %cst_75 = arith.constant 1.000000e+00 : f32
    %272 = vector.broadcast %cst_75 : f32 to vector<16x64xf32>
    %273 = arith.subf %272, %264 : vector<16x64xf32>
    %274 = arith.mulf %273, %271 : vector<16x64xf32>
    %275 = arith.mulf %264, %250 : vector<16x64xf32>
    %276 = arith.addf %274, %275 : vector<16x64xf32>
    %c144_76 = arith.constant 144 : index
    %c0_77 = arith.constant 0 : index
    %277 = vector.load %arg7[%c144_76, %c0_77] : memref<160x64xf32, #tpu.memory_space<vmem>>, vector<16x64xf32>
    tpu.vector_store %arg7[%c144_76, %c0_77], %276 {strides = array<i32>} : memref<160x64xf32, #tpu.memory_space<vmem>>, vector<16x64xf32>,
    %c0_78 = arith.constant 0 : index
    %c0_79 = arith.constant 0 : index
    %278 = vector.load %arg7[%c0_78, %c0_79] : memref<160x64xf32, #tpu.memory_space<vmem>>, vector<160x64xf32>
    %c0_80 = arith.constant 0 : index
    %c0_81 = arith.constant 0 : index
    %279 = vector.load %arg3[%c0_80, %c0_81] : memref<64x2xf32, #tpu.memory_space<vmem>>, vector<64x2xf32>
    %cst_82 = arith.constant dense<0.000000e+00> : vector<160x2xf32>
    %280 = tpu.matmul %278, %279, %cst_82 {dimension_numbers = #tpu.dot_dimension_numbers<[1], [0], [0], [1], [0, 0, 1, 1], [], []>} : vector<160x64xf32>, vector<64x2xf32>, vector<160x2xf32> -> vector<160x2xf32>
    %281 = vector.broadcast %4 : vector<1x2xf32> to vector<160x2xf32>
    %282 = arith.addf %280, %281 : vector<160x2xf32>
    %cst_83 = arith.constant 0.000000e+00 : f32
    %283 = vector.broadcast %cst_83 : f32 to vector<16x2xf32>
    %284 = vector.extract_strided_slice %282 {offsets = [0, 0], sizes = [16, 2], strides = [1, 1]} : vector<160x2xf32> to vector<16x2xf32>
    %285 = arith.addf %283, %284 : vector<16x2xf32>
    %c0_84 = arith.constant 0 : index
    %c0_85 = arith.constant 0 : index
    %286 = vector.load %arg5[%c0_84, %c0_85] : memref<160x2xf32, #tpu.memory_space<vmem>>, vector<16x2xf32>
    tpu.vector_store %arg5[%c0_84, %c0_85], %285 {strides = array<i32>} : memref<160x2xf32, #tpu.memory_space<vmem>>, vector<16x2xf32>,
    %287 = vector.extract_strided_slice %282 {offsets = [16, 0], sizes = [16, 2], strides = [1, 1]} : vector<160x2xf32> to vector<16x2xf32>
    %288 = arith.addf %285, %287 : vector<16x2xf32>
    %c16_86 = arith.constant 16 : index
    %c0_87 = arith.constant 0 : index
    %289 = vector.load %arg5[%c16_86, %c0_87] : memref<160x2xf32, #tpu.memory_space<vmem>>, vector<16x2xf32>
    tpu.vector_store %arg5[%c16_86, %c0_87], %288 {strides = array<i32>} : memref<160x2xf32, #tpu.memory_space<vmem>>, vector<16x2xf32>,
    %290 = vector.extract_strided_slice %282 {offsets = [32, 0], sizes = [16, 2], strides = [1, 1]} : vector<160x2xf32> to vector<16x2xf32>
    %291 = arith.addf %288, %290 : vector<16x2xf32>
    %c32_88 = arith.constant 32 : index
    %c0_89 = arith.constant 0 : index
    %292 = vector.load %arg5[%c32_88, %c0_89] : memref<160x2xf32, #tpu.memory_space<vmem>>, vector<16x2xf32>
    tpu.vector_store %arg5[%c32_88, %c0_89], %291 {strides = array<i32>} : memref<160x2xf32, #tpu.memory_space<vmem>>, vector<16x2xf32>,
    %293 = vector.extract_strided_slice %282 {offsets = [48, 0], sizes = [16, 2], strides = [1, 1]} : vector<160x2xf32> to vector<16x2xf32>
    %294 = arith.addf %291, %293 : vector<16x2xf32>
    %c48_90 = arith.constant 48 : index
    %c0_91 = arith.constant 0 : index
    %295 = vector.load %arg5[%c48_90, %c0_91] : memref<160x2xf32, #tpu.memory_space<vmem>>, vector<16x2xf32>
    tpu.vector_store %arg5[%c48_90, %c0_91], %294 {strides = array<i32>} : memref<160x2xf32, #tpu.memory_space<vmem>>, vector<16x2xf32>,
    %296 = vector.extract_strided_slice %282 {offsets = [64, 0], sizes = [16, 2], strides = [1, 1]} : vector<160x2xf32> to vector<16x2xf32>
    %297 = arith.addf %294, %296 : vector<16x2xf32>
    %c64_92 = arith.constant 64 : index
    %c0_93 = arith.constant 0 : index
    %298 = vector.load %arg5[%c64_92, %c0_93] : memref<160x2xf32, #tpu.memory_space<vmem>>, vector<16x2xf32>
    tpu.vector_store %arg5[%c64_92, %c0_93], %297 {strides = array<i32>} : memref<160x2xf32, #tpu.memory_space<vmem>>, vector<16x2xf32>,
    %299 = vector.extract_strided_slice %282 {offsets = [80, 0], sizes = [16, 2], strides = [1, 1]} : vector<160x2xf32> to vector<16x2xf32>
    %300 = arith.addf %297, %299 : vector<16x2xf32>
    %c80_94 = arith.constant 80 : index
    %c0_95 = arith.constant 0 : index
    %301 = vector.load %arg5[%c80_94, %c0_95] : memref<160x2xf32, #tpu.memory_space<vmem>>, vector<16x2xf32>
    tpu.vector_store %arg5[%c80_94, %c0_95], %300 {strides = array<i32>} : memref<160x2xf32, #tpu.memory_space<vmem>>, vector<16x2xf32>,
    %302 = vector.extract_strided_slice %282 {offsets = [96, 0], sizes = [16, 2], strides = [1, 1]} : vector<160x2xf32> to vector<16x2xf32>
    %303 = arith.addf %300, %302 : vector<16x2xf32>
    %c96_96 = arith.constant 96 : index
    %c0_97 = arith.constant 0 : index
    %304 = vector.load %arg5[%c96_96, %c0_97] : memref<160x2xf32, #tpu.memory_space<vmem>>, vector<16x2xf32>
    tpu.vector_store %arg5[%c96_96, %c0_97], %303 {strides = array<i32>} : memref<160x2xf32, #tpu.memory_space<vmem>>, vector<16x2xf32>,
    %305 = vector.extract_strided_slice %282 {offsets = [112, 0], sizes = [16, 2], strides = [1, 1]} : vector<160x2xf32> to vector<16x2xf32>
    %306 = arith.addf %303, %305 : vector<16x2xf32>
    %c112_98 = arith.constant 112 : index
    %c0_99 = arith.constant 0 : index
    %307 = vector.load %arg5[%c112_98, %c0_99] : memref<160x2xf32, #tpu.memory_space<vmem>>, vector<16x2xf32>
    tpu.vector_store %arg5[%c112_98, %c0_99], %306 {strides = array<i32>} : memref<160x2xf32, #tpu.memory_space<vmem>>, vector<16x2xf32>,
    %308 = vector.extract_strided_slice %282 {offsets = [128, 0], sizes = [16, 2], strides = [1, 1]} : vector<160x2xf32> to vector<16x2xf32>
    %309 = arith.addf %306, %308 : vector<16x2xf32>
    %c128_100 = arith.constant 128 : index
    %c0_101 = arith.constant 0 : index
    %310 = vector.load %arg5[%c128_100, %c0_101] : memref<160x2xf32, #tpu.memory_space<vmem>>, vector<16x2xf32>
    tpu.vector_store %arg5[%c128_100, %c0_101], %309 {strides = array<i32>} : memref<160x2xf32, #tpu.memory_space<vmem>>, vector<16x2xf32>,
    %311 = vector.extract_strided_slice %282 {offsets = [144, 0], sizes = [16, 2], strides = [1, 1]} : vector<160x2xf32> to vector<16x2xf32>
    %312 = arith.addf %309, %311 : vector<16x2xf32>
    %c144_102 = arith.constant 144 : index
    %c0_103 = arith.constant 0 : index
    %313 = vector.load %arg5[%c144_102, %c0_103] : memref<160x2xf32, #tpu.memory_space<vmem>>, vector<16x2xf32>
    tpu.vector_store %arg5[%c144_102, %c0_103], %312 {strides = array<i32>} : memref<160x2xf32, #tpu.memory_space<vmem>>, vector<16x2xf32>,
    return
  }
}

</mosaic_0001>

<bundles_post_ra>
// kernel: tpu_custom_call.1
= control target key start
LH: loop header
LB: loop body
LE: loop exit
PB: predicated region body
PF: predicated region fallthrough
CT: control target
= control target key end

     0   :  { %v2052_v0 = vmov 0   ;;  %s2053_s22 = smov 64   ;;  %vm158_vm0 = vcmask 261120   ;;  %v78_v35 = vlaneseq  ;;  %vm323_vm1 = vcmask 523264   ;;  %s2781_s1 = inlined_call_operand.vmem [shape: f32[16,1], index: 1, kind: input, shape index: {}]   ;;  %s2782_s4 = inlined_call_operand.vmem [shape: f32[8,192], index: 4, kind: input, shape index: {}]   ;;  %s2783_s2 = inlined_call_operand.vmem [shape: bf16[96,192], index: 2, kind: input, shape index: {}]   ;;  %s2784_s0 = inlined_call_operand.vmem [shape: bf16[160,32], index: 0, kind: input, shape index: {}]   ;;  %s2785_s3 = inlined_call_operand.vmem [shape: f32[64,2], index: 3, kind: input, shape index: {}]   ;;  %s2786_s5 = inlined_call_operand.vmem [shape: f32[160,2], index: 5, kind: output, shape index: {}]  }
   0x1   :  { %1895 = vset.pattern.permute.xlu0 %v2052_v0  ;;  %v37_v1 = vld [vmem:[%s2781_s1] sm:$0xff]  ;;  %v23_v2 = vld [vmem:[%s2782_s4 + $0x9] ss:$0 sm:$0xff]  ;;  %221 = vmatprep.mubr.bf16.mxu0 %v2052_v0  ;;  %v1899_v6 = vld [vmem:[%s2783_s2 + $0x14] ss:$8 sps:$4 sm:$0xff]   ;;  %vm1678_vm2 = vcmask 15360  }
   0x2   :  { %41 = vperm.xlu0 %1895, %v37_v1   ;;  %52 = vrot.lane.b32.xlu1 %v23_v2, %s2053_s22  ;;  %v38_v3 = vld [vmem:[%s2781_s1 + $0x8] sm:$0xff]  ;;  %v1901_v7 = vld [vmem:[%s2783_s2 + $0x10] ss:$8 sps:$4 sm:$0xff]   ;;  %v1902_v10 = vld [vmem:[%s2784_s0] sm:$0xff]   ;;  %v79_v36 = vshrl.u32 %v78_v35, 7 }
   0x3   :  { %548 = vmatprep.mubr.bf16.mxu1 %v2052_v0  ;;  %v1896_v4 = vld [vmem:[%s2783_s2 + $0x4] ss:$8 sps:$4 sm:$0xff]   ;;  %v1898_v5 = vld [vmem:[%s2783_s2] ss:$8 sps:$4 sm:$0xff]   ;;  %v2126_v11 = vld [vmem:[%s2783_s2 + $0x34] ss:$8 sps:$4 sm:$0xff]  }
   0x4   :  { %189 = vmatprep.subr.bf16.mxu0 %v1896_v4  ;;  %v2112_v8 = vld [vmem:[%s2783_s2 + $0x24] ss:$8 sps:$4 sm:$0xff]   ;;  %v2117_v9 = vld [vmem:[%s2783_s2 + $0x20] ss:$8 sps:$4 sm:$0xff]   ;;  %v2135_v12 = vld [vmem:[%s2783_s2 + $0x30] ss:$8 sps:$4 sm:$0xff]  }
   0x5   :  { %190 = vmatpush1.bf16.msra.mxu0 %v1898_v5  ;;  %516 = vmatprep.subr.bf16.mxu1 %v2112_v8  ;;  %v2143_v13 = vld [vmem:[%s2783_s2 + $0x44] ss:$8 sps:$4 sm:$0xff]   ;;  %v2152_v15 = vld [vmem:[%s2783_s2 + $0x40] ss:$8 sps:$4 sm:$0xff]   ;;  %v2159_v16 = vld [vmem:[%s2783_s2 + $0x54] ss:$8 sps:$4 sm:$0xff]  }
   0x6   :  { %46 = vperm.xlu0 %1895, %v38_v3   ;;  %191 = vmatprep.subr.bf16.mxu0 %v1899_v6  ;;  %v1906_v14 = vld [vmem:[%s2784_s0 + $0x8] sm:$0xff]   ;;  %v2168_v17 = vld [vmem:[%s2783_s2 + $0x50] ss:$8 sps:$4 sm:$0xff]   ;;  %v1912_v20 = vld [vmem:[%s2784_s0 + $0x20] sm:$0xff]   ;;  %v80_v37 = vsub.s32 0, %v79_v36  ;;  %v84_v38 = vsub.s32 1, %v79_v36 }
   0x7   :  { %517 = vmatpush1.bf16.msra.mxu1 %v2117_v9  ;;  %v1907_v18 = vld [vmem:[%s2784_s0 + $0x10] sm:$0xff]   ;;  %v1911_v19 = vld [vmem:[%s2784_s0 + $0x18] sm:$0xff]   ;;  %v1913_v21 = vld [vmem:[%s2784_s0 + $0x28] sm:$0xff]  }
   0x8   :  { %518 = vmatprep.subr.bf16.mxu1 %v2126_v11  ;;  %v1917_v22 = vld [vmem:[%s2784_s0 + $0x30] sm:$0xff]   ;;  %v1918_v23 = vld [vmem:[%s2784_s0 + $0x38] sm:$0xff]   ;;  %v1922_v24 = vld [vmem:[%s2784_s0 + $0x40] sm:$0xff]  }
   0x9   :  { %192 = vmatpush1.bf16.msra.mxu0 %v1901_v7  ;;  %v1923_v25 = vld [vmem:[%s2784_s0 + $0x48] sm:$0xff]   ;;  %v2220_v26 = vld [vmem:[%s2782_s4 + $0x1] ss:$0 sm:$0xff] }
   0xa   :  { %414 = vmatprep.subr.bf16.mxu0 %v2112_v8  ;;  %v21_v39 = vld [vmem:[%s2782_s4] ss:$8 sm:$0x3] }
   0xb   :  { %519 = vmatpush1.bf16.msra.mxu1 %v2135_v12  ;;  %v2234_v40 = vrot.slane %v21_v39, %v80_v37  ;;  %v2236_v41 = vrot.slane %v21_v39, %v84_v38 }
   0xc   :  { %1735 = vmatmul.mubr.msk.bf16.vlgmr.msra.gmra.mrb[0].mxu0 %vm158_vm0, %v1902_v10  ;;  %520 = vmatprep.subr.bf16.mxu1 %v2143_v13 }
   0xd   :  { %415 = vmatpush1.bf16.msra.mxu0 %v2117_v9  ;;  %231 = vmatprep.mubr.bf16.mxu0 %v2052_v0 }
   0xe   :  { %416 = vmatprep.subr.bf16.mxu0 %v2126_v11 }
   0xf   :  { %521 = vmatpush1.bf16.msra.mxu1 %v2152_v15 }
  0x10   :  { %522 = vmatprep.subr.bf16.mxu1 %v2159_v16 }
  0x11   :  { %417 = vmatpush1.bf16.msra.mxu0 %v2135_v12 }
  0x12   :  { %418 = vmatprep.subr.bf16.mxu0 %v2143_v13 }
  0x13   :  { %523 = vmatpush1.bf16.msra.mxu1 %v2168_v17 }
  0x14   :  { %1736 = vmatmul.mubr.msk.bf16.gmra.mrb[4].mxu0 %vm158_vm0, %v1906_v14  ;;  %618 = vmatprep.subr.bf16.mxu1 %v2112_v8 }
  0x15   :  { %241 = vmatprep.mubr.bf16.mxu0 %v2052_v0  ;;  %419 = vmatpush1.bf16.msra.mxu0 %v2152_v15 }
  0x16   :  { %420 = vmatprep.subr.bf16.mxu0 %v2159_v16 }
  0x19   :  { %421 = vmatpush1.bf16.msra.mxu0 %v2168_v17 }
  0x1a   :  { %924 = vmatprep.subr.bf16.mxu0 %v2112_v8 }
  0x1c   :  { %1737 = vmatmul.mubr.msk.bf16.gmra.mrb[8].mxu0 %vm158_vm0, %v1907_v18 }
  0x1d   :  { %251 = vmatprep.mubr.bf16.mxu0 %v2052_v0 }
  0x24   :  { %1738 = vmatmul.mubr.msk.bf16.gmra.mrb[12].mxu0 %vm158_vm0, %v1911_v19 }
  0x25   :  { %261 = vmatprep.mubr.bf16.mxu0 %v2052_v0 }
  0x2c   :  { %1739 = vmatmul.mubr.msk.bf16.gmra.mrb[16].mxu0 %vm158_vm0, %v1912_v20 }
  0x2d   :  { %271 = vmatprep.mubr.bf16.mxu0 %v2052_v0 }
  0x34   :  { %1740 = vmatmul.mubr.msk.bf16.gmra.mrb[20].mxu0 %vm158_vm0, %v1913_v21 }
  0x35   :  { %281 = vmatprep.mubr.bf16.mxu0 %v2052_v0 }
  0x3c   :  { %1741 = vmatmul.mubr.msk.bf16.gmra.mrb[24].mxu0 %vm158_vm0, %v1917_v22 }
  0x3d   :  { %291 = vmatprep.mubr.bf16.mxu0 %v2052_v0 }
  0x44   :  { %1742 = vmatmul.mubr.msk.bf16.gmra.mrb[28].mxu0 %vm158_vm0, %v1918_v23 }
  0x45   :  { %301 = vmatprep.mubr.bf16.mxu0 %v2052_v0 }
  0x4c   :  { %1743 = vmatmul.mubr.msk.bf16.gmra.mrb[32].mxu0 %vm158_vm0, %v1922_v24 }
  0x4d   :  { %311 = vmatprep.mubr.bf16.mxu0 %v2052_v0 }
  0x54   :  { %1744 = vmatmul.mubr.msk.bf16.gmra.mrb[36].mxu0 %vm158_vm0, %v1923_v25 }
  0x55   :  { %446 = vmatprep.mubr.bf16.mxu0 %v2052_v0 }
  0x74   :  { %v53_v29 = vpop.permute.xlu1 %52 }
  0x81   :  { %v42_v27 = vpop.permute.xlu0 %41 }
  0x82   :  { %v49_v28 = vmul.f32 %v42_v27, %v2220_v26 }
  0x84   :  { %v2224_v32 = vadd.f32 %v53_v29, %v49_v28 }
  0x85   :  { %v47_v30 = vpop.permute.xlu0 %46 }
  0x86   :  { %v50_v31 = vmul.f32 %v47_v30, %v2220_v26 }
  0x88   :  { %v2226_v33 = vadd.f32 %v53_v29, %v50_v31 }
  0x8a   :  { %v367_v34 = vpack.c.bf16 %v2226_v33, %v2224_v32 }
  0x8c   :  { %369 = vrot.lane.b32.xlu1 %v367_v34, %s2053_s22 }
  0xdf   :  { %v223_v42 = vpop.f32.mrb[0].mxu0 }
  0xe0   :  { %v2239_v43 = vadd.f32 %v223_v42, %v2234_v40  ;;  %v225_v44 = vpop.f32.mrb[1].mxu0 }
  0xe1   :  { %v226_v45 = vadd.f32 %v225_v44, %v2236_v41  ;;  %v227_v46 = vpop.f32.mrb[2].mxu0 }
  0xe2   :  { %v2243_v47 = vadd.f32 %v227_v46, %v2234_v40  ;;  %v229_v48 = vpop.f32.mrb[3].mxu0 }
  0xe3   :  { %324 = vst.msk [vmem:[#allocation2 + $0x8] sm:$0xff] %vm323_vm1, %v226_v45  ;;  %v230_v49 = vadd.f32 %v229_v48, %v2236_v41 }
  0xe5   :  { %326 = vst.msk [vmem:[#allocation2 + $0x18] sm:$0xff] %vm323_vm1, %v230_v49 }
  0xe7   :  { %v233_v50 = vpop.f32.mrb[4].mxu0 }
  0xe8   :  { %v2249_v51 = vadd.f32 %v233_v50, %v2234_v40  ;;  %v235_v52 = vpop.f32.mrb[5].mxu0 }
  0xe9   :  { %v236_v53 = vadd.f32 %v235_v52, %v2236_v41  ;;  %v237_v54 = vpop.f32.mrb[6].mxu0 }
  0xea   :  { %v2253_v55 = vadd.f32 %v237_v54, %v2234_v40  ;;  %v239_v56 = vpop.f32.mrb[7].mxu0 }
  0xeb   :  { %328 = vst.msk [vmem:[#allocation2 + $0x28] sm:$0xff] %vm323_vm1, %v236_v53  ;;  %v240_v57 = vadd.f32 %v239_v56, %v2236_v41 }
  0xed   :  { %330 = vst.msk [vmem:[#allocation2 + $0x38] sm:$0xff] %vm323_vm1, %v240_v57 }
  0xef   :  { %v243_v58 = vpop.f32.mrb[8].mxu0 }
  0xf0   :  { %v2259_v59 = vadd.f32 %v243_v58, %v2234_v40  ;;  %v245_v60 = vpop.f32.mrb[9].mxu0 }
  0xf1   :  { %v246_v61 = vadd.f32 %v245_v60, %v2236_v41  ;;  %v247_v62 = vpop.f32.mrb[10].mxu0 }
  0xf2   :  { %v2263_v63 = vadd.f32 %v247_v62, %v2234_v40  ;;  %v249_v1 = vpop.f32.mrb[11].mxu0 }
  0xf3   :  { %332 = vst.msk [vmem:[#allocation2 + $0x48] sm:$0xff] %vm323_vm1, %v246_v61  ;;  %v250_v3 = vadd.f32 %v249_v1, %v2236_v41 }
  0xf5   :  { %334 = vst.msk [vmem:[#allocation2 + $0x58] sm:$0xff] %vm323_vm1, %v250_v3 }
  0xf7   :  { %v253_v4 = vpop.f32.mrb[12].mxu0 }
  0xf8   :  { %v2273_v5 = vadd.f32 %v253_v4, %v2234_v40  ;;  %v255_v6 = vpop.f32.mrb[13].mxu0 }
  0xf9   :  { %v256_v7 = vadd.f32 %v255_v6, %v2236_v41  ;;  %v257_v10 = vpop.f32.mrb[14].mxu0 }
  0xfa   :  { %v2278_v14 = vadd.f32 %v257_v10, %v2234_v40  ;;  %v259_v18 = vpop.f32.mrb[15].mxu0 }
  0xfb   :  { %336 = vst.msk [vmem:[#allocation2 + $0x68] sm:$0xff] %vm323_vm1, %v256_v7  ;;  %v260_v19 = vadd.f32 %v259_v18, %v2236_v41 }
  0xfd   :  { %338 = vst.msk [vmem:[#allocation2 + $0x78] sm:$0xff] %vm323_vm1, %v260_v19 }
  0xfe   :  { %v370_v2 = vpop.permute.xlu1 %369 }
  0xff   :  { %1753 = vmatmul.mubr.msk.bf16.vlgmr.msra.gmra.mrb[40].mxu0 %vm323_vm1, %v370_v2  ;;  %v263_v20 = vpop.f32.mrb[16].mxu0 }
 0x100   :  { %925 = vmatpush1.bf16.msra.mxu0 %v2117_v9  ;;  %956 = vmatprep.mubr.bf16.mxu0 %v2052_v0  ;;  %v2287_v21 = vadd.f32 %v263_v20, %v2234_v40  ;;  %v265_v22 = vpop.f32.mrb[17].mxu0 }
 0x101   :  { %926 = vmatprep.subr.bf16.mxu0 %v2126_v11  ;;  %v266_v23 = vadd.f32 %v265_v22, %v2236_v41  ;;  %v267_v24 = vpop.f32.mrb[18].mxu0 }
 0x102   :  { %v2292_v25 = vadd.f32 %v267_v24, %v2234_v40  ;;  %v269_v27 = vpop.f32.mrb[19].mxu0 }
 0x103   :  { %340 = vst.msk [vmem:[#allocation2 + $0x88] sm:$0xff] %vm323_vm1, %v266_v23  ;;  %v270_v28 = vadd.f32 %v269_v27, %v2236_v41 }
 0x104   :  { %927 = vmatpush1.bf16.msra.mxu0 %v2135_v12 }
 0x105   :  { %928 = vmatprep.subr.bf16.mxu0 %v2143_v13  ;;  %342 = vst.msk [vmem:[#allocation2 + $0x98] sm:$0xff] %vm323_vm1, %v270_v28 }
 0x107   :  { %v273_v29 = vpop.f32.mrb[20].mxu0 }
 0x108   :  { %929 = vmatpush1.bf16.msra.mxu0 %v2152_v15  ;;  %v2299_v30 = vadd.f32 %v273_v29, %v2234_v40  ;;  %v275_v31 = vpop.f32.mrb[21].mxu0 }
 0x109   :  { %930 = vmatprep.subr.bf16.mxu0 %v2159_v16  ;;  %v276_v34 = vadd.f32 %v275_v31, %v2236_v41  ;;  %v277_v35 = vpop.f32.mrb[22].mxu0 }
 0x10a   :  { %v2303_v36 = vadd.f32 %v277_v35, %v2234_v40  ;;  %v279_v37 = vpop.f32.mrb[23].mxu0 }
 0x10b   :  { %344 = vst.msk [vmem:[#allocation2 + $0xa8] sm:$0xff] %vm323_vm1, %v276_v34  ;;  %v280_v38 = vadd.f32 %v279_v37, %v2236_v41 }
 0x10c   :  { %931 = vmatpush1.bf16.msra.mxu0 %v2168_v17 }
 0x10d   :  { %1128 = vmatprep.subr.bf16.mxu0 %v2112_v8  ;;  %346 = vst.msk [vmem:[#allocation2 + $0xb8] sm:$0xff] %vm323_vm1, %v280_v38 }
 0x10f   :  { %v283_v39 = vpop.f32.mrb[24].mxu0 }
 0x110   :  { %v2309_v42 = vadd.f32 %v283_v39, %v2234_v40  ;;  %v285_v44 = vpop.f32.mrb[25].mxu0 }
 0x111   :  { %v286_v45 = vadd.f32 %v285_v44, %v2236_v41  ;;  %v287_v46 = vpop.f32.mrb[26].mxu0 }
 0x112   :  { %v2313_v48 = vadd.f32 %v287_v46, %v2234_v40  ;;  %v289_v49 = vpop.f32.mrb[27].mxu0 }
 0x113   :  { %348 = vst.msk [vmem:[#allocation2 + $0xc8] sm:$0xff] %vm323_vm1, %v286_v45  ;;  %v290_v50 = vadd.f32 %v289_v49, %v2236_v41 }
 0x115   :  { %350 = vst.msk [vmem:[#allocation2 + $0xd8] sm:$0xff] %vm323_vm1, %v290_v50 }
 0x117   :  { %v293_v52 = vpop.f32.mrb[28].mxu0 }
 0x118   :  { %v2319_v53 = vadd.f32 %v293_v52, %v2234_v40  ;;  %v295_v54 = vpop.f32.mrb[29].mxu0 }
 0x119   :  { %v296_v56 = vadd.f32 %v295_v54, %v2236_v41  ;;  %v297_v57 = vpop.f32.mrb[30].mxu0 }
 0x11a   :  { %v2323_v58 = vadd.f32 %v297_v57, %v2234_v40  ;;  %v299_v60 = vpop.f32.mrb[31].mxu0 }
 0x11b   :  { %352 = vst.msk [vmem:[#allocation2 + $0xe8] sm:$0xff] %vm323_vm1, %v296_v56  ;;  %v300_v61 = vadd.f32 %v299_v60, %v2236_v41  ;;  %v364_v56 = vld [vmem:[#allocation2 + $0x8] sm:$0xff]  ;;  %v366_v60 = vld [vmem:[#allocation2 + $0x18] sm:$0xff] }
 0x11d   :  { %354 = vst.msk [vmem:[#allocation2 + $0xf8] sm:$0xff] %vm323_vm1, %v300_v61 }
 0x11f   :  { %v303_v62 = vpop.f32.mrb[32].mxu0 }
 0x120   :  { %v2329_v1 = vadd.f32 %v303_v62, %v2234_v40  ;;  %v305_v2 = vpop.f32.mrb[33].mxu0 }
 0x121   :  { %v306_v3 = vadd.f32 %v305_v2, %v2236_v41  ;;  %v307_v4 = vpop.f32.mrb[34].mxu0 }
 0x122   :  { %v2333_v6 = vadd.f32 %v307_v4, %v2234_v40  ;;  %v309_v7 = vpop.f32.mrb[35].mxu0 }
 0x123   :  { %356 = vst.msk [vmem:[#allocation2 + $0x108] sm:$0xff] %vm323_vm1, %v306_v3  ;;  %v310_v10 = vadd.f32 %v309_v7, %v2236_v41 }
 0x125   :  { %358 = vst.msk [vmem:[#allocation2 + $0x118] sm:$0xff] %vm323_vm1, %v310_v10 }
 0x127   :  { %v313_v18 = vpop.f32.mrb[36].mxu0 }
 0x128   :  { %v2339_v19 = vadd.f32 %v313_v18, %v2234_v40  ;;  %v315_v20 = vpop.f32.mrb[37].mxu0 }
 0x129   :  { %v316_v22 = vadd.f32 %v315_v20, %v2236_v41  ;;  %v317_v23 = vpop.f32.mrb[38].mxu0 }
 0x12a   :  { %v2343_v24 = vadd.f32 %v317_v23, %v2234_v40  ;;  %v319_v27 = vpop.f32.mrb[39].mxu0 }
 0x12b   :  { %360 = vst.msk [vmem:[#allocation2 + $0x128] sm:$0xff] %vm323_vm1, %v316_v22  ;;  %v320_v28 = vadd.f32 %v319_v27, %v2236_v41 }
 0x12d   :  { %362 = vst.msk [vmem:[#allocation2 + $0x138] sm:$0xff] %vm323_vm1, %v320_v28 }
 0x1d2   :  { %v448_v29 = vpop.f32.mrb[40].mxu0 }
 0x1d3   :  { %v457_v31 = vadd.f32 %v448_v29, %v2239_v43  ;;  %v450_v34 = vpop.f32.mrb[41].mxu0 }
 0x1d4   :  { %v452_v35 = vpop.f32.mrb[42].mxu0  ;;  %v471_v41 = vadd.f32 %v450_v34, %v2220_v26 }
 0x1d5   :  { %v1754_v37 = vmul.f32 -1.442695, %v457_v31  ;;  %v458_v38 = vadd.f32 %v452_v35, %v2243_v47  ;;  %v454_v39 = vpop.f32.mrb[43].mxu0 }
 0x1d6   :  { %v472_v43 = vadd.f32 %v454_v39, %v2220_v26 }
 0x1d7   :  { %1924 = vpow2.f32 %v1754_v37  ;;  %v1755_v44 = vmul.f32 -1.442695, %v458_v38 }
 0x1d9   :  { %1926 = vpow2.f32 %v1755_v44 }
 0x1e1   :  { %v1925_v40 = vpop.eup %1924 }
 0x1e2   :  { %v465_v45 = vadd.f32 1.0, %v1925_v40 }
 0x1e3   :  { %v1927_v46 = vpop.eup %1926 }
 0x1e4   :  { %1928 = vrcp.f32 %v465_v45  ;;  %v466_v49 = vadd.f32 1.0, %v1927_v46 }
 0x1e6   :  { %1930 = vrcp.f32 %v466_v49 }
 0x1ee   :  { %v1929_v50 = vpop.eup %1928 }
 0x1ef   :  { %v473_v52 = vmul.f32 %v1929_v50, %v471_v41  ;;  %v479_v3 = vsub.f32 1.0, %v1929_v50  ;;  %v491_v20 = vmul.f32 %v1929_v50, %v2224_v32 }
 0x1f0   :  { %v1931_v54 = vpop.eup %1930 }
 0x1f1   :  { %v475_v57 = vadd.f32 %v473_v52, %v364_v56  ;;  %v474_v47 = vmul.f32 %v1931_v54, %v472_v43  ;;  %v480_v10 = vsub.f32 1.0, %v1931_v54  ;;  %v492_v22 = vmul.f32 %v1931_v54, %v2226_v33  ;;  %v506_v54 = vld [vmem:[#allocation2 + $0x28] sm:$0xff] }
 0x1f3   :  { %1932 = vtanh.f32 %v475_v57  ;;  %v476_v61 = vadd.f32 %v474_v47, %v366_v60  ;;  %v508_v57 = vld [vmem:[#allocation2 + $0x38] sm:$0xff] }
 0x1f5   :  { %1934 = vtanh.f32 %v476_v61 }
 0x1fd   :  { %v1933_v62 = vpop.eup %1932 }
 0x1fe   :  { %483 = vrot.lane.b32.xlu0 %v1933_v62, %s2053_s22 }
 0x1ff   :  { %v1935_v2 = vpop.eup %1934 }
 0x200   :  { %485 = vrot.lane.b32.xlu1 %v1935_v2, %s2053_s22 }
 0x270   :  { %v484_v4 = vpop.permute.xlu0 %483 }
 0x271   :  { %v489_v7 = vmul.f32 %v484_v4, %v479_v3 }
 0x272   :  { %v486_v18 = vpop.permute.xlu1 %485 }
 0x273   :  { %v490_v23 = vmul.f32 %v486_v18, %v480_v10  ;;  %v2356_v27 = vadd.f32 %v491_v20, %v489_v7 }
 0x275   :  { %v2358_v28 = vadd.f32 %v492_v22, %v490_v23 }
 0x277   :  { %v509_v29 = vpack.c.bf16 %v2358_v28, %v2356_v27 }
 0x279   :  { %511 = vrot.lane.b32.xlu0 %v509_v29, %s2053_s22 }
 0x2eb   :  { %v512_v31 = vpop.permute.xlu0 %511 }
 0x2ec   :  { %1756 = vmatmul.mubr.msk.bf16.vlgmr.msra.gmra.mrb[0].mxu1 %vm323_vm1, %v512_v31 }
 0x2ed   :  { %619 = vmatpush1.bf16.msra.mxu1 %v2117_v9  ;;  %650 = vmatprep.mubr.bf16.mxu1 %v2052_v0 }
 0x2ee   :  { %620 = vmatprep.subr.bf16.mxu1 %v2126_v11 }
 0x2f1   :  { %621 = vmatpush1.bf16.msra.mxu1 %v2135_v12 }
 0x2f2   :  { %622 = vmatprep.subr.bf16.mxu1 %v2143_v13 }
 0x2f5   :  { %623 = vmatpush1.bf16.msra.mxu1 %v2152_v15 }
 0x2f6   :  { %624 = vmatprep.subr.bf16.mxu1 %v2159_v16 }
 0x2f9   :  { %625 = vmatpush1.bf16.msra.mxu1 %v2168_v17 }
 0x2fa   :  { %720 = vmatprep.subr.bf16.mxu1 %v2112_v8 }
 0x3bf   :  { %v550_v32 = vpop.f32.mrb[0].mxu1 }
 0x3c0   :  { %v559_v33 = vadd.f32 %v550_v32, %v2249_v51  ;;  %v552_v34 = vpop.f32.mrb[1].mxu1 }
 0x3c1   :  { %v554_v35 = vpop.f32.mrb[2].mxu1  ;;  %v573_v41 = vadd.f32 %v552_v34, %v2220_v26 }
 0x3c2   :  { %v1757_v37 = vmul.f32 -1.442695, %v559_v33  ;;  %v560_v38 = vadd.f32 %v554_v35, %v2253_v55  ;;  %v556_v39 = vpop.f32.mrb[3].mxu1 }
 0x3c3   :  { %v574_v51 = vadd.f32 %v556_v39, %v2220_v26 }
 0x3c4   :  { %1936 = vpow2.f32 %v1757_v37  ;;  %v1758_v44 = vmul.f32 -1.442695, %v560_v38 }
 0x3c6   :  { %1938 = vpow2.f32 %v1758_v44 }
 0x3ce   :  { %v1937_v40 = vpop.eup %1936 }
 0x3cf   :  { %v567_v45 = vadd.f32 1.0, %v1937_v40 }
 0x3d0   :  { %v1939_v46 = vpop.eup %1938 }
 0x3d1   :  { %1940 = vrcp.f32 %v567_v45  ;;  %v568_v49 = vadd.f32 1.0, %v1939_v46 }
 0x3d3   :  { %1942 = vrcp.f32 %v568_v49 }
 0x3db   :  { %v1941_v50 = vpop.eup %1940 }
 0x3dc   :  { %v575_v52 = vmul.f32 %v1941_v50, %v573_v41  ;;  %v581_v62 = vsub.f32 1.0, %v1941_v50  ;;  %v593_v10 = vmul.f32 %v1941_v50, %v2356_v27 }
 0x3dd   :  { %v1943_v43 = vpop.eup %1942 }
 0x3de   :  { %v577_v56 = vadd.f32 %v575_v52, %v506_v54  ;;  %v576_v55 = vmul.f32 %v1943_v43, %v574_v51  ;;  %v582_v4 = vsub.f32 1.0, %v1943_v43  ;;  %v594_v18 = vmul.f32 %v1943_v43, %v2358_v28  ;;  %v608_v43 = vld [vmem:[#allocation2 + $0x48] sm:$0xff] }
 0x3e0   :  { %1944 = vtanh.f32 %v577_v56  ;;  %v578_v47 = vadd.f32 %v576_v55, %v508_v57  ;;  %v610_v56 = vld [vmem:[#allocation2 + $0x58] sm:$0xff] }
 0x3e2   :  { %1946 = vtanh.f32 %v578_v47 }
 0x3ea   :  { %v1945_v60 = vpop.eup %1944 }
 0x3eb   :  { %585 = vrot.lane.b32.xlu1 %v1945_v60, %s2053_s22 }
 0x3ec   :  { %v1947_v61 = vpop.eup %1946 }
 0x3ed   :  { %587 = vrot.lane.b32.xlu0 %v1947_v61, %s2053_s22 }
 0x45d   :  { %v586_v2 = vpop.permute.xlu1 %585 }
 0x45e   :  { %v591_v3 = vmul.f32 %v586_v2, %v581_v62 }
 0x45f   :  { %v588_v7 = vpop.permute.xlu0 %587 }
 0x460   :  { %v592_v20 = vmul.f32 %v588_v7, %v582_v4  ;;  %v2381_v22 = vadd.f32 %v593_v10, %v591_v3 }
 0x462   :  { %v2383_v23 = vadd.f32 %v594_v18, %v592_v20 }
 0x464   :  { %v611_v29 = vpack.c.bf16 %v2383_v23, %v2381_v22 }
 0x466   :  { %613 = vrot.lane.b32.xlu1 %v611_v29, %s2053_s22 }
 0x4d8   :  { %v614_v31 = vpop.permute.xlu1 %613 }
 0x4d9   :  { %1759 = vmatmul.mubr.msk.bf16.vlgmr.msra.gmra.mrb[4].mxu1 %vm323_vm1, %v614_v31 }
 0x4da   :  { %721 = vmatpush1.bf16.msra.mxu1 %v2117_v9  ;;  %752 = vmatprep.mubr.bf16.mxu1 %v2052_v0 }
 0x4db   :  { %722 = vmatprep.subr.bf16.mxu1 %v2126_v11 }
 0x4de   :  { %723 = vmatpush1.bf16.msra.mxu1 %v2135_v12 }
 0x4df   :  { %724 = vmatprep.subr.bf16.mxu1 %v2143_v13 }
 0x4e2   :  { %725 = vmatpush1.bf16.msra.mxu1 %v2152_v15 }
 0x4e3   :  { %726 = vmatprep.subr.bf16.mxu1 %v2159_v16 }
 0x4e6   :  { %727 = vmatpush1.bf16.msra.mxu1 %v2168_v17 }
 0x4e7   :  { %822 = vmatprep.subr.bf16.mxu1 %v2112_v8 }
 0x5ac   :  { %v652_v32 = vpop.f32.mrb[4].mxu1 }
 0x5ad   :  { %v661_v33 = vadd.f32 %v652_v32, %v2259_v59  ;;  %v654_v34 = vpop.f32.mrb[5].mxu1 }
 0x5ae   :  { %v656_v35 = vpop.f32.mrb[6].mxu1  ;;  %v675_v41 = vadd.f32 %v654_v34, %v2220_v26 }
 0x5af   :  { %v1760_v37 = vmul.f32 -1.442695, %v661_v33  ;;  %v662_v38 = vadd.f32 %v656_v35, %v2263_v63  ;;  %v658_v39 = vpop.f32.mrb[7].mxu1 }
 0x5b0   :  { %v676_v59 = vadd.f32 %v658_v39, %v2220_v26 }
 0x5b1   :  { %1948 = vpow2.f32 %v1760_v37  ;;  %v1761_v44 = vmul.f32 -1.442695, %v662_v38 }
 0x5b3   :  { %1950 = vpow2.f32 %v1761_v44 }
 0x5bb   :  { %v1949_v40 = vpop.eup %1948 }
 0x5bc   :  { %v669_v45 = vadd.f32 1.0, %v1949_v40 }
 0x5bd   :  { %v1951_v46 = vpop.eup %1950 }
 0x5be   :  { %1952 = vrcp.f32 %v669_v45  ;;  %v670_v49 = vadd.f32 1.0, %v1951_v46 }
 0x5c0   :  { %1954 = vrcp.f32 %v670_v49 }
 0x5c8   :  { %v1953_v50 = vpop.eup %1952 }
 0x5c9   :  { %v677_v52 = vmul.f32 %v1953_v50, %v675_v41  ;;  %v683_v60 = vsub.f32 1.0, %v1953_v50  ;;  %v695_v4 = vmul.f32 %v1953_v50, %v2381_v22 }
 0x5ca   :  { %v1955_v51 = vpop.eup %1954 }
 0x5cb   :  { %v679_v54 = vadd.f32 %v677_v52, %v608_v43  ;;  %v678_v63 = vmul.f32 %v1955_v51, %v676_v59  ;;  %v684_v2 = vsub.f32 1.0, %v1955_v51  ;;  %v696_v7 = vmul.f32 %v1955_v51, %v2383_v23  ;;  %v710_v51 = vld [vmem:[#allocation2 + $0x68] sm:$0xff] }
 0x5cd   :  { %1956 = vtanh.f32 %v679_v54  ;;  %v680_v55 = vadd.f32 %v678_v63, %v610_v56  ;;  %v712_v54 = vld [vmem:[#allocation2 + $0x78] sm:$0xff] }
 0x5cf   :  { %1958 = vtanh.f32 %v680_v55 }
 0x5d7   :  { %v1957_v57 = vpop.eup %1956 }
 0x5d8   :  { %687 = vrot.lane.b32.xlu0 %v1957_v57, %s2053_s22 }
 0x5d9   :  { %v1959_v47 = vpop.eup %1958 }
 0x5da   :  { %689 = vrot.lane.b32.xlu1 %v1959_v47, %s2053_s22 }
 0x64a   :  { %v688_v61 = vpop.permute.xlu0 %687 }
 0x64b   :  { %v693_v62 = vmul.f32 %v688_v61, %v683_v60 }
 0x64c   :  { %v690_v3 = vpop.permute.xlu1 %689 }
 0x64d   :  { %v694_v10 = vmul.f32 %v690_v3, %v684_v2  ;;  %v2406_v18 = vadd.f32 %v695_v4, %v693_v62 }
 0x64f   :  { %v2408_v20 = vadd.f32 %v696_v7, %v694_v10 }
 0x651   :  { %v713_v29 = vpack.c.bf16 %v2408_v20, %v2406_v18 }
 0x653   :  { %715 = vrot.lane.b32.xlu0 %v713_v29, %s2053_s22 }
 0x6c5   :  { %v716_v31 = vpop.permute.xlu0 %715 }
 0x6c6   :  { %1762 = vmatmul.mubr.msk.bf16.vlgmr.msra.gmra.mrb[8].mxu1 %vm323_vm1, %v716_v31 }
 0x6c7   :  { %823 = vmatpush1.bf16.msra.mxu1 %v2117_v9  ;;  %854 = vmatprep.mubr.bf16.mxu1 %v2052_v0 }
 0x6c8   :  { %824 = vmatprep.subr.bf16.mxu1 %v2126_v11 }
 0x6cb   :  { %825 = vmatpush1.bf16.msra.mxu1 %v2135_v12 }
 0x6cc   :  { %826 = vmatprep.subr.bf16.mxu1 %v2143_v13 }
 0x6cf   :  { %827 = vmatpush1.bf16.msra.mxu1 %v2152_v15 }
 0x6d0   :  { %828 = vmatprep.subr.bf16.mxu1 %v2159_v16 }
 0x6d3   :  { %829 = vmatpush1.bf16.msra.mxu1 %v2168_v17 }
 0x6d4   :  { %1026 = vmatprep.subr.bf16.mxu1 %v2112_v8 }
 0x799   :  { %v754_v32 = vpop.f32.mrb[8].mxu1 }
 0x79a   :  { %v763_v33 = vadd.f32 %v754_v32, %v2273_v5  ;;  %v756_v34 = vpop.f32.mrb[9].mxu1 }
 0x79b   :  { %v758_v35 = vpop.f32.mrb[10].mxu1  ;;  %v777_v41 = vadd.f32 %v756_v34, %v2220_v26 }
 0x79c   :  { %v1763_v37 = vmul.f32 -1.442695, %v763_v33  ;;  %v764_v38 = vadd.f32 %v758_v35, %v2278_v14  ;;  %v760_v39 = vpop.f32.mrb[11].mxu1 }
 0x79d   :  { %v778_v5 = vadd.f32 %v760_v39, %v2220_v26 }
 0x79e   :  { %1960 = vpow2.f32 %v1763_v37  ;;  %v1764_v44 = vmul.f32 -1.442695, %v764_v38 }
 0x7a0   :  { %1962 = vpow2.f32 %v1764_v44 }
 0x7a8   :  { %v1961_v40 = vpop.eup %1960 }
 0x7a9   :  { %v771_v45 = vadd.f32 1.0, %v1961_v40 }
 0x7aa   :  { %v1963_v46 = vpop.eup %1962 }
 0x7ab   :  { %1964 = vrcp.f32 %v771_v45  ;;  %v772_v49 = vadd.f32 1.0, %v1963_v46 }
 0x7ad   :  { %1966 = vrcp.f32 %v772_v49 }
 0x7b5   :  { %v1965_v50 = vpop.eup %1964 }
 0x7b6   :  { %v779_v52 = vmul.f32 %v1965_v50, %v777_v41  ;;  %v785_v57 = vsub.f32 1.0, %v1965_v50  ;;  %v797_v2 = vmul.f32 %v1965_v50, %v2406_v18 }
 0x7b7   :  { %v1967_v59 = vpop.eup %1966 }
 0x7b8   :  { %v781_v43 = vadd.f32 %v779_v52, %v710_v51  ;;  %v780_v14 = vmul.f32 %v1967_v59, %v778_v5  ;;  %v786_v61 = vsub.f32 1.0, %v1967_v59  ;;  %v798_v3 = vmul.f32 %v1967_v59, %v2408_v20  ;;  %v812_v59 = vld [vmem:[#allocation2 + $0x88] sm:$0xff] }
 0x7ba   :  { %1968 = vtanh.f32 %v781_v43  ;;  %v782_v63 = vadd.f32 %v780_v14, %v712_v54  ;;  %v814_v43 = vld [vmem:[#allocation2 + $0x98] sm:$0xff] }
 0x7bc   :  { %1970 = vtanh.f32 %v782_v63 }
 0x7c4   :  { %v1969_v56 = vpop.eup %1968 }
 0x7c5   :  { %789 = vrot.lane.b32.xlu1 %v1969_v56, %s2053_s22 }
 0x7c6   :  { %v1971_v55 = vpop.eup %1970 }
 0x7c7   :  { %791 = vrot.lane.b32.xlu0 %v1971_v55, %s2053_s22 }
 0x837   :  { %v790_v47 = vpop.permute.xlu1 %789 }
 0x838   :  { %v795_v60 = vmul.f32 %v790_v47, %v785_v57 }
 0x839   :  { %v792_v62 = vpop.permute.xlu0 %791 }
 0x83a   :  { %v796_v4 = vmul.f32 %v792_v62, %v786_v61  ;;  %v2431_v7 = vadd.f32 %v797_v2, %v795_v60 }
 0x83c   :  { %v2433_v10 = vadd.f32 %v798_v3, %v796_v4 }
 0x83e   :  { %v815_v29 = vpack.c.bf16 %v2433_v10, %v2431_v7 }
 0x840   :  { %817 = vrot.lane.b32.xlu1 %v815_v29, %s2053_s22 }
 0x8b2   :  { %v818_v31 = vpop.permute.xlu1 %817 }
 0x8b3   :  { %1765 = vmatmul.mubr.msk.bf16.vlgmr.msra.gmra.mrb[12].mxu1 %vm323_vm1, %v818_v31 }
 0x8b4   :  { %1027 = vmatpush1.bf16.msra.mxu1 %v2117_v9  ;;  %1058 = vmatprep.mubr.bf16.mxu1 %v2052_v0 }
 0x8b5   :  { %1028 = vmatprep.subr.bf16.mxu1 %v2126_v11 }
 0x8b8   :  { %1029 = vmatpush1.bf16.msra.mxu1 %v2135_v12 }
 0x8b9   :  { %1030 = vmatprep.subr.bf16.mxu1 %v2143_v13 }
 0x8bc   :  { %1031 = vmatpush1.bf16.msra.mxu1 %v2152_v15 }
 0x8bd   :  { %1032 = vmatprep.subr.bf16.mxu1 %v2159_v16 }
 0x8c0   :  { %1033 = vmatpush1.bf16.msra.mxu1 %v2168_v17 }
 0x8c1   :  { %1230 = vmatprep.subr.bf16.mxu1 %v2112_v8 }
 0x986   :  { %v856_v32 = vpop.f32.mrb[12].mxu1 }
 0x987   :  { %v865_v33 = vadd.f32 %v856_v32, %v2287_v21  ;;  %v858_v34 = vpop.f32.mrb[13].mxu1 }
 0x988   :  { %v860_v35 = vpop.f32.mrb[14].mxu1  ;;  %v879_v41 = vadd.f32 %v858_v34, %v2220_v26 }
 0x989   :  { %v1766_v37 = vmul.f32 -1.442695, %v865_v33  ;;  %v866_v38 = vadd.f32 %v860_v35, %v2292_v25  ;;  %v862_v39 = vpop.f32.mrb[15].mxu1 }
 0x98a   :  { %v880_v21 = vadd.f32 %v862_v39, %v2220_v26 }
 0x98b   :  { %1972 = vpow2.f32 %v1766_v37  ;;  %v1767_v44 = vmul.f32 -1.442695, %v866_v38 }
 0x98d   :  { %1974 = vpow2.f32 %v1767_v44 }
 0x995   :  { %v1973_v40 = vpop.eup %1972 }
 0x996   :  { %v873_v45 = vadd.f32 1.0, %v1973_v40 }
 0x997   :  { %v1975_v46 = vpop.eup %1974 }
 0x998   :  { %1976 = vrcp.f32 %v873_v45  ;;  %v874_v49 = vadd.f32 1.0, %v1975_v46  ;;  %v914_v45 = vld [vmem:[#allocation2 + $0xa8] sm:$0xff] }
 0x99a   :  { %1978 = vrcp.f32 %v874_v49  ;;  %v916_v49 = vld [vmem:[#allocation2 + $0xb8] sm:$0xff] }
 0x9a2   :  { %v1977_v50 = vpop.eup %1976 }
 0x9a3   :  { %v881_v52 = vmul.f32 %v1977_v50, %v879_v41  ;;  %v887_v56 = vsub.f32 1.0, %v1977_v50  ;;  %v899_v61 = vmul.f32 %v1977_v50, %v2431_v7 }
 0x9a4   :  { %v1979_v5 = vpop.eup %1978 }
 0x9a5   :  { %v883_v51 = vadd.f32 %v881_v52, %v812_v59  ;;  %v882_v25 = vmul.f32 %v1979_v5, %v880_v21  ;;  %v888_v47 = vsub.f32 1.0, %v1979_v5  ;;  %v900_v62 = vmul.f32 %v1979_v5, %v2433_v10 }
 0x9a7   :  { %1980 = vtanh.f32 %v883_v51  ;;  %v884_v14 = vadd.f32 %v882_v25, %v814_v43 }
 0x9a9   :  { %1982 = vtanh.f32 %v884_v14 }
 0x9b1   :  { %v1981_v54 = vpop.eup %1980 }
 0x9b2   :  { %891 = vrot.lane.b32.xlu0 %v1981_v54, %s2053_s22 }
 0x9b3   :  { %v1983_v63 = vpop.eup %1982 }
 0x9b4   :  { %893 = vrot.lane.b32.xlu1 %v1983_v63, %s2053_s22 }
 0xa24   :  { %v892_v55 = vpop.permute.xlu0 %891 }
 0xa25   :  { %v897_v57 = vmul.f32 %v892_v55, %v887_v56 }
 0xa26   :  { %v894_v60 = vpop.permute.xlu1 %893 }
 0xa27   :  { %v898_v2 = vmul.f32 %v894_v60, %v888_v47  ;;  %v2456_v3 = vadd.f32 %v899_v61, %v897_v57  ;;  %v2044_v47 = vld [vmem:[%s2783_s2 + $0x20] ss:$8 sps:$4 sm:$0xff]   ;;  %v2045_v60 = vld [vmem:[%s2783_s2 + $0x34] ss:$8 sps:$4 sm:$0xff]   ;;  %v2046_v61 = vld [vmem:[%s2783_s2 + $0x30] ss:$8 sps:$4 sm:$0xff]  }
 0xa29   :  { %v2458_v4 = vadd.f32 %v900_v62, %v898_v2  ;;  %v2047_v62 = vld [vmem:[%s2783_s2 + $0x44] ss:$8 sps:$4 sm:$0xff]   ;;  %v2048_v2 = vld [vmem:[%s2783_s2 + $0x40] ss:$8 sps:$4 sm:$0xff]  }
 0xa2b   :  { %v917_v29 = vpack.c.bf16 %v2458_v4, %v2456_v3 }
 0xa2d   :  { %919 = vrot.lane.b32.xlu0 %v917_v29, %s2053_s22  ;;  %v2049_v29 = vld [vmem:[%s2783_s2 + $0x54] ss:$8 sps:$4 sm:$0xff]  }
 0xa9f   :  { %v920_v31 = vpop.permute.xlu0 %919 }
 0xaa0   :  { %1768 = vmatmul.mubr.msk.bf16.vlgmr.msra.gmra.mrb[44].mxu0 %vm323_vm1, %v920_v31 }
 0xaa1   :  { %1129 = vmatpush1.bf16.msra.mxu0 %v2117_v9  ;;  %1160 = vmatprep.mubr.bf16.mxu0 %v2052_v0 }
 0xaa2   :  { %1130 = vmatprep.subr.bf16.mxu0 %v2126_v11 }
 0xaa5   :  { %1131 = vmatpush1.bf16.msra.mxu0 %v2135_v12 }
 0xaa6   :  { %1132 = vmatprep.subr.bf16.mxu0 %v2143_v13 }
 0xaa9   :  { %1133 = vmatpush1.bf16.msra.mxu0 %v2152_v15 }
 0xaaa   :  { %1134 = vmatprep.subr.bf16.mxu0 %v2159_v16 }
 0xaad   :  { %1135 = vmatpush1.bf16.msra.mxu0 %v2168_v17 }
 0xaae   :  { %1332 = vmatprep.subr.bf16.mxu0 %v2112_v8 }
 0xb73   :  { %v958_v32 = vpop.f32.mrb[44].mxu0 }
 0xb74   :  { %v967_v33 = vadd.f32 %v958_v32, %v2299_v30  ;;  %v960_v9 = vpop.f32.mrb[45].mxu0 }
 0xb75   :  { %v962_v34 = vpop.f32.mrb[46].mxu0  ;;  %v981_v8 = vadd.f32 %v960_v9, %v2220_v26 }
 0xb76   :  { %v1769_v35 = vmul.f32 -1.442695, %v967_v33  ;;  %v968_v11 = vadd.f32 %v962_v34, %v2303_v36  ;;  %v964_v37 = vpop.f32.mrb[47].mxu0 }
 0xb77   :  { %v982_v30 = vadd.f32 %v964_v37, %v2220_v26 }
 0xb78   :  { %1984 = vpow2.f32 %v1769_v35  ;;  %v1770_v12 = vmul.f32 -1.442695, %v968_v11 }
 0xb7a   :  { %1986 = vpow2.f32 %v1770_v12 }
 0xb82   :  { %v1985_v13 = vpop.eup %1984 }
 0xb83   :  { %v975_v15 = vadd.f32 1.0, %v1985_v13 }
 0xb84   :  { %v1987_v38 = vpop.eup %1986 }
 0xb85   :  { %1988 = vrcp.f32 %v975_v15  ;;  %v976_v16 = vadd.f32 1.0, %v1987_v38 }
 0xb87   :  { %1990 = vrcp.f32 %v976_v16 }
 0xb8f   :  { %v1989_v39 = vpop.eup %1988 }
 0xb90   :  { %v983_v44 = vmul.f32 %v1989_v39, %v981_v8  ;;  %v989_v21 = vsub.f32 1.0, %v1989_v39  ;;  %v1001_v43 = vmul.f32 %v1989_v39, %v2456_v3 }
 0xb91   :  { %v1991_v40 = vpop.eup %1990 }
 0xb92   :  { %v985_v46 = vadd.f32 %v983_v44, %v914_v45  ;;  %v984_v36 = vmul.f32 %v1991_v40, %v982_v30  ;;  %v990_v51 = vsub.f32 1.0, %v1991_v40  ;;  %v1002_v14 = vmul.f32 %v1991_v40, %v2458_v4  ;;  %v1016_v44 = vld [vmem:[#allocation2 + $0xc8] sm:$0xff]  ;;  %v1018_v40 = vld [vmem:[#allocation2 + $0xd8] sm:$0xff] }
 0xb94   :  { %1992 = vtanh.f32 %v985_v46  ;;  %v986_v41 = vadd.f32 %v984_v36, %v916_v49 }
 0xb96   :  { %1994 = vtanh.f32 %v986_v41 }
 0xb9e   :  { %v1993_v50 = vpop.eup %1992 }
 0xb9f   :  { %993 = vrot.lane.b32.xlu1 %v1993_v50, %s2053_s22 }
 0xba0   :  { %v1995_v52 = vpop.eup %1994 }
 0xba1   :  { %995 = vrot.lane.b32.xlu0 %v1995_v52, %s2053_s22 }
 0xc11   :  { %v994_v5 = vpop.permute.xlu1 %993 }
 0xc12   :  { %v999_v59 = vmul.f32 %v994_v5, %v989_v21 }
 0xc13   :  { %v996_v25 = vpop.permute.xlu0 %995 }
 0xc14   :  { %v1000_v54 = vmul.f32 %v996_v25, %v990_v51  ;;  %v2481_v63 = vadd.f32 %v1001_v43, %v999_v59 }
 0xc16   :  { %v2483_v56 = vadd.f32 %v1002_v14, %v1000_v54  ;;  %v2050_v54 = vld [vmem:[%s2783_s2 + $0x50] ss:$8 sps:$4 sm:$0xff]  }
 0xc18   :  { %v1019_v55 = vpack.c.bf16 %v2483_v56, %v2481_v63 }
 0xc1a   :  { %1021 = vrot.lane.b32.xlu1 %v1019_v55, %s2053_s22 }
 0xc8c   :  { %v1022_v57 = vpop.permute.xlu1 %1021 }
 0xc8d   :  { %1771 = vmatmul.mubr.msk.bf16.vlgmr.msra.gmra.mrb[16].mxu1 %vm323_vm1, %v1022_v57 }
 0xc8e   :  { %1231 = vmatpush1.bf16.msra.mxu1 %v2044_v47  ;;  %1262 = vmatprep.mubr.bf16.mxu1 %v2052_v0 }
 0xc8f   :  { %1232 = vmatprep.subr.bf16.mxu1 %v2045_v60 }
 0xc92   :  { %1233 = vmatpush1.bf16.msra.mxu1 %v2046_v61 }
 0xc93   :  { %1234 = vmatprep.subr.bf16.mxu1 %v2047_v62 }
 0xc96   :  { %1235 = vmatpush1.bf16.msra.mxu1 %v2048_v2 }
 0xc97   :  { %1236 = vmatprep.subr.bf16.mxu1 %v2049_v29 }
 0xc9a   :  { %1237 = vmatpush1.bf16.msra.mxu1 %v2168_v17 }
 0xd60   :  { %v1060_v31 = vpop.f32.mrb[16].mxu1 }
 0xd61   :  { %v1069_v32 = vadd.f32 %v1060_v31, %v2309_v42  ;;  %v1062_v33 = vpop.f32.mrb[17].mxu1 }
 0xd62   :  { %v1064_v9 = vpop.f32.mrb[18].mxu1  ;;  %v1083_v17 = vadd.f32 %v1062_v33, %v2220_v26 }
 0xd63   :  { %v1772_v34 = vmul.f32 -1.442695, %v1069_v32  ;;  %v1070_v35 = vadd.f32 %v1064_v9, %v2313_v48  ;;  %v1066_v11 = vpop.f32.mrb[19].mxu1 }
 0xd64   :  { %v1084_v42 = vadd.f32 %v1066_v11, %v2220_v26 }
 0xd65   :  { %1996 = vpow2.f32 %v1772_v34  ;;  %v1773_v37 = vmul.f32 -1.442695, %v1070_v35 }
 0xd67   :  { %1998 = vpow2.f32 %v1773_v37  ;;  %v1118_v37 = vld [vmem:[#allocation2 + $0xe8] sm:$0xff] }
 0xd6f   :  { %v1997_v12 = vpop.eup %1996 }
 0xd70   :  { %v1077_v13 = vadd.f32 1.0, %v1997_v12 }
 0xd71   :  { %v1999_v15 = vpop.eup %1998 }
 0xd72   :  { %2000 = vrcp.f32 %v1077_v13  ;;  %v1078_v38 = vadd.f32 1.0, %v1999_v15  ;;  %v1120_v15 = vld [vmem:[#allocation2 + $0xf8] sm:$0xff] }
 0xd74   :  { %2002 = vrcp.f32 %v1078_v38 }
 0xd7c   :  { %v2001_v16 = vpop.eup %2000 }
 0xd7d   :  { %v1085_v8 = vmul.f32 %v2001_v16, %v1083_v17  ;;  %v1091_v49 = vsub.f32 1.0, %v2001_v16  ;;  %v1103_v26 = vmul.f32 %v2001_v16, %v2481_v63 }
 0xd7e   :  { %v2003_v39 = vpop.eup %2002 }
 0xd7f   :  { %v1087_v30 = vadd.f32 %v1085_v8, %v1016_v44  ;;  %v1086_v48 = vmul.f32 %v2003_v39, %v1084_v42  ;;  %v1092_v52 = vsub.f32 1.0, %v2003_v39  ;;  %v1104_v5 = vmul.f32 %v2003_v39, %v2483_v56 }
 0xd81   :  { %2004 = vtanh.f32 %v1087_v30  ;;  %v1088_v45 = vadd.f32 %v1086_v48, %v1018_v40 }
 0xd83   :  { %2006 = vtanh.f32 %v1088_v45 }
 0xd8b   :  { %v2005_v46 = vpop.eup %2004 }
 0xd8c   :  { %1095 = vrot.lane.b32.xlu0 %v2005_v46, %s2053_s22 }
 0xd8d   :  { %v2007_v36 = vpop.eup %2006 }
 0xd8e   :  { %1097 = vrot.lane.b32.xlu1 %v2007_v36, %s2053_s22 }
 0xdfe   :  { %v1096_v41 = vpop.permute.xlu0 %1095 }
 0xdff   :  { %v1101_v50 = vmul.f32 %v1096_v41, %v1091_v49 }
 0xe00   :  { %v1098_v21 = vpop.permute.xlu1 %1097 }
 0xe01   :  { %v1102_v59 = vmul.f32 %v1098_v21, %v1092_v52  ;;  %v2517_v51 = vadd.f32 %v1103_v26, %v1101_v50 }
 0xe03   :  { %v2519_v25 = vadd.f32 %v1104_v5, %v1102_v59 }
 0xe05   :  { %v1121_v43 = vpack.c.bf16 %v2519_v25, %v2517_v51 }
 0xe07   :  { %1123 = vrot.lane.b32.xlu0 %v1121_v43, %s2053_s22 }
 0xe79   :  { %v1124_v14 = vpop.permute.xlu0 %1123 }
 0xe7a   :  { %1774 = vmatmul.mubr.msk.bf16.vlgmr.msra.gmra.mrb[48].mxu0 %vm323_vm1, %v1124_v14 }
 0xe7b   :  { %1333 = vmatpush1.bf16.msra.mxu0 %v2044_v47  ;;  %1364 = vmatprep.mubr.bf16.mxu0 %v2052_v0 }
 0xe7c   :  { %1334 = vmatprep.subr.bf16.mxu0 %v2045_v60 }
 0xe7f   :  { %1335 = vmatpush1.bf16.msra.mxu0 %v2046_v61 }
 0xe80   :  { %1336 = vmatprep.subr.bf16.mxu0 %v2047_v62 }
 0xe83   :  { %1337 = vmatpush1.bf16.msra.mxu0 %v2048_v2 }
 0xe84   :  { %1338 = vmatprep.subr.bf16.mxu0 %v2049_v29  ;;  %v2534_v29 = vld [vmem:[%s2782_s4 + $0x1] ss:$0 sm:$0xff] }
 0xe87   :  { %1339 = vmatpush1.bf16.msra.mxu0 %v2050_v54 }
 0xf4d   :  { %v1162_v55 = vpop.f32.mrb[48].mxu0 }
 0xf4e   :  { %v1171_v57 = vadd.f32 %v1162_v55, %v2319_v53  ;;  %v1164_v31 = vpop.f32.mrb[49].mxu0 }
 0xf4f   :  { %v1166_v32 = vpop.f32.mrb[50].mxu0  ;;  %v1185_v53 = vadd.f32 %v2534_v29, %v1164_v31 }
 0xf50   :  { %v1775_v33 = vmul.f32 -1.442695, %v1171_v57  ;;  %v1172_v47 = vadd.f32 %v1166_v32, %v2323_v58  ;;  %v1168_v9 = vpop.f32.mrb[51].mxu0 }
 0xf51   :  { %v1186_v58 = vadd.f32 %v2534_v29, %v1168_v9 }
 0xf52   :  { %2008 = vpow2.f32 %v1775_v33  ;;  %v1776_v0 = vmul.f32 -1.442695, %v1172_v47 }
 0xf54   :  { %2010 = vpow2.f32 %v1776_v0  ;;  %v1220_v0 = vld [vmem:[#allocation2 + $0x108] sm:$0xff] }
 0xf5c   :  { %v2009_v60 = vpop.eup %2008 }
 0xf5d   :  { %v1179_v61 = vadd.f32 1.0, %v2009_v60 }
 0xf5e   :  { %v2011_v62 = vpop.eup %2010 }
 0xf5f   :  { %2012 = vrcp.f32 %v1179_v61  ;;  %v1180_v2 = vadd.f32 1.0, %v2011_v62  ;;  %v1222_v61 = vld [vmem:[#allocation2 + $0x118] sm:$0xff] }
 0xf61   :  { %2014 = vrcp.f32 %v1180_v2 }
 0xf69   :  { %v2013_v34 = vpop.eup %2012 }
 0xf6a   :  { %v1187_v35 = vmul.f32 %v2013_v34, %v1185_v53  ;;  %v1193_v8 = vsub.f32 1.0, %v2013_v34  ;;  %v1205_v48 = vmul.f32 %v2013_v34, %v2517_v51 }
 0xf6b   :  { %v2015_v11 = vpop.eup %2014 }
 0xf6c   :  { %v1189_v12 = vadd.f32 %v1187_v35, %v1118_v37  ;;  %v1188_v13 = vmul.f32 %v2015_v11, %v1186_v58  ;;  %v1194_v44 = vsub.f32 1.0, %v2015_v11  ;;  %v1206_v40 = vmul.f32 %v2015_v11, %v2519_v25 }
 0xf6e   :  { %2016 = vtanh.f32 %v1189_v12  ;;  %v1190_v38 = vadd.f32 %v1188_v13, %v1120_v15 }
 0xf70   :  { %2018 = vtanh.f32 %v1190_v38 }
 0xf78   :  { %v2017_v17 = vpop.eup %2016 }
 0xf79   :  { %1197 = vrot.lane.b32.xlu1 %v2017_v17, %s2053_s22 }
 0xf7a   :  { %v2019_v16 = vpop.eup %2018 }
 0xf7b   :  { %1199 = vrot.lane.b32.xlu0 %v2019_v16, %s2053_s22 }
 0xfeb   :  { %v1198_v42 = vpop.permute.xlu1 %1197 }
 0xfec   :  { %v1203_v39 = vmul.f32 %v1198_v42, %v1193_v8  ;;  %v1443_v42 = vld [vmem:[%s2785_s3] sm:$0xff] }
 0xfed   :  { %v1200_v30 = vpop.permute.xlu0 %1199 }
 0xfee   :  { %v1204_v45 = vmul.f32 %v1200_v30, %v1194_v44  ;;  %v2542_v46 = vadd.f32 %v1205_v48, %v1203_v39  ;;  %v1444_v39 = vld [vmem:[%s2785_s3 + $0x8] sm:$0xff] }
 0xfef   :  { %v1877_v44 = vpack.c.bf16 %v1444_v39, %v1443_v42 }
 0xff0   :  { %v2544_v36 = vadd.f32 %v1206_v40, %v1204_v45 }
 0xff1   :  { %1878 = vmatprep.subr.bf16.mxu1 %v1877_v44 }
 0xff2   :  { %v1223_v49 = vpack.c.bf16 %v2544_v36, %v2542_v46 }
 0xff4   :  { %1225 = vrot.lane.b32.xlu1 %v1223_v49, %s2053_s22 }
0x1066   :  { %v1226_v41 = vpop.permute.xlu1 %1225 }
0x1067   :  { %1777 = vmatmul.mubr.msk.bf16.vlgmr.msra.gmra.mrb[20].mxu1 %vm323_vm1, %v1226_v41 }
0x1068   :  { %1880 = vmatpush3.bf16.msra.mxu1 %v1877_v44 }
0x113a   :  { %v1264_v50 = vpop.f32.mrb[20].mxu1 }
0x113b   :  { %v1273_v52 = vadd.f32 %v1264_v50, %v2329_v1  ;;  %v1266_v21 = vpop.f32.mrb[21].mxu1 }
0x113c   :  { %v1268_v26 = vpop.f32.mrb[22].mxu1  ;;  %v1287_v32 = vadd.f32 %v2534_v29, %v1266_v21 }
0x113d   :  { %v1778_v5 = vmul.f32 -1.442695, %v1273_v52  ;;  %v1274_v59 = vadd.f32 %v1268_v26, %v2333_v6  ;;  %v1270_v43 = vpop.f32.mrb[23].mxu1 }
0x113e   :  { %v1288_v1 = vadd.f32 %v2534_v29, %v1270_v43 }
0x113f   :  { %2020 = vpow2.f32 %v1778_v5  ;;  %v1779_v14 = vmul.f32 -1.442695, %v1274_v59 }
0x1141   :  { %2022 = vpow2.f32 %v1779_v14 }
0x1149   :  { %v2021_v54 = vpop.eup %2020 }
0x114a   :  { %v1281_v55 = vadd.f32 1.0, %v2021_v54 }
0x114b   :  { %v2023_v57 = vpop.eup %2022 }
0x114c   :  { %2024 = vrcp.f32 %v1281_v55  ;;  %v1282_v31 = vadd.f32 1.0, %v2023_v57  ;;  %v1322_v57 = vld [vmem:[#allocation2 + $0x128] sm:$0xff] }
0x114e   :  { %2026 = vrcp.f32 %v1282_v31  ;;  %v1446_v31 = vld [vmem:[%s2785_s3 + $0x18] sm:$0xff] }
0x1156   :  { %v2025_v33 = vpop.eup %2024 }
0x1157   :  { %v1289_v47 = vmul.f32 %v2025_v33, %v1287_v32  ;;  %v1295_v34 = vsub.f32 1.0, %v2025_v33  ;;  %v1307_v12 = vmul.f32 %v2025_v33, %v2542_v46 }
0x1158   :  { %v2027_v9 = vpop.eup %2026 }
0x1159   :  { %v1291_v60 = vadd.f32 %v1289_v47, %v1220_v0  ;;  %v1290_v6 = vmul.f32 %v2027_v9, %v1288_v1  ;;  %v1296_v11 = vsub.f32 1.0, %v2027_v9  ;;  %v1308_v13 = vmul.f32 %v2027_v9, %v2544_v36  ;;  %v1324_v47 = vld [vmem:[#allocation2 + $0x138] sm:$0xff]  ;;  %v1448_v0 = vld [vmem:[%s2785_s3 + $0x28] sm:$0xff] }
0x115b   :  { %2028 = vtanh.f32 %v1291_v60  ;;  %v1292_v62 = vadd.f32 %v1290_v6, %v1222_v61  ;;  %v1449_v6 = vld [vmem:[%s2785_s3 + $0x30] sm:$0xff]  ;;  %v1450_v61 = vld [vmem:[%s2785_s3 + $0x38] sm:$0xff] }
0x115d   :  { %2030 = vtanh.f32 %v1292_v62  ;;  %v1889_v62 = vpack.c.bf16 %v1450_v61, %v1449_v6 }
0x1165   :  { %v2029_v2 = vpop.eup %2028 }
0x1166   :  { %1299 = vrot.lane.b32.xlu0 %v2029_v2, %s2053_s22 }
0x1167   :  { %v2031_v53 = vpop.eup %2030 }
0x1168   :  { %1301 = vrot.lane.b32.xlu1 %v2031_v53, %s2053_s22 }
0x11d8   :  { %v1300_v35 = vpop.permute.xlu0 %1299 }
0x11d9   :  { %v1305_v58 = vmul.f32 %v1300_v35, %v1295_v34 }
0x11da   :  { %v1302_v37 = vpop.permute.xlu1 %1301 }
0x11db   :  { %v1306_v15 = vmul.f32 %v1302_v37, %v1296_v11  ;;  %v2558_v38 = vadd.f32 %v1307_v12, %v1305_v58 }
0x11dd   :  { %v2560_v17 = vadd.f32 %v1308_v13, %v1306_v15 }
0x11df   :  { %v1325_v16 = vpack.c.bf16 %v2560_v17, %v2558_v38 }
0x11e1   :  { %1327 = vrot.lane.b32.xlu0 %v1325_v16, %s2053_s22 }
0x1253   :  { %v1328_v8 = vpop.permute.xlu0 %1327 }
0x1254   :  { %1780 = vmatmul.mubr.msk.bf16.vlgmr.msra.gmra.mrb[52].mxu0 %vm323_vm1, %v1328_v8 }
0x1327   :  { %v1366_v30 = vpop.f32.mrb[52].mxu0 }
0x1328   :  { %v1375_v48 = vadd.f32 %v1366_v30, %v2339_v19  ;;  %v1368_v40 = vpop.f32.mrb[53].mxu0 }
0x1329   :  { %v1370_v45 = vpop.f32.mrb[54].mxu0  ;;  %v1389_v43 = vadd.f32 %v2534_v29, %v1368_v40 }
0x132a   :  { %v1781_v49 = vmul.f32 -1.442695, %v1375_v48  ;;  %v1376_v41 = vadd.f32 %v1370_v45, %v2343_v24  ;;  %v1372_v50 = vpop.f32.mrb[55].mxu0  ;;  %v1445_v24 = vld [vmem:[%s2785_s3 + $0x10] sm:$0xff] }
0x132b   :  { %v1390_v19 = vadd.f32 %v2534_v29, %v1372_v50  ;;  %v1881_v1 = vpack.c.bf16 %v1446_v31, %v1445_v24  ;;  %v1447_v29 = vld [vmem:[%s2785_s3 + $0x20] sm:$0xff] }
0x132c   :  { %2032 = vpow2.f32 %v1781_v49  ;;  %v1782_v52 = vmul.f32 -1.442695, %v1376_v41  ;;  %v1885_v60 = vpack.c.bf16 %v1448_v0, %v1447_v29  ;;  %v2679_v31 = vld [vmem:[%s2782_s4 + $0x2] ss:$0 sm:$0xff] }
0x132d   :  { %1882 = vmatprep.subr.bf16.mxu1 %v1881_v1 }
0x132e   :  { %2034 = vpow2.f32 %v1782_v52  ;;  %1884 = vmatpush3.bf16.msra.mxu1 %v1881_v1 }
0x132f   :  { %1886 = vmatprep.subr.bf16.mxu1 %v1885_v60 }
0x1332   :  { %1888 = vmatpush3.bf16.msra.mxu1 %v1885_v60 }
0x1333   :  { %1890 = vmatprep.subr.bf16.mxu1 %v1889_v62 }
0x1336   :  { %v2033_v21 = vpop.eup %2032  ;;  %1892 = vmatpush3.bf16.msra.mxu1 %v1889_v62 }
0x1337   :  { %v1383_v26 = vadd.f32 1.0, %v2033_v21 }
0x1338   :  { %v2035_v5 = vpop.eup %2034 }
0x1339   :  { %2036 = vrcp.f32 %v1383_v26  ;;  %v1384_v59 = vadd.f32 1.0, %v2035_v5 }
0x133b   :  { %2038 = vrcp.f32 %v1384_v59 }
0x1343   :  { %v2037_v14 = vpop.eup %2036 }
0x1344   :  { %v1391_v54 = vmul.f32 %v2037_v14, %v1389_v43 }
0x1345   :  { %v2039_v55 = vpop.eup %2038 }
0x1346   :  { %v1393_v32 = vadd.f32 %v1391_v54, %v1322_v57  ;;  %v1392_v33 = vmul.f32 %v2039_v55, %v1390_v19 }
0x1348   :  { %2040 = vtanh.f32 %v1393_v32  ;;  %v1394_v9 = vadd.f32 %v1392_v33, %v1324_v47 }
0x134a   :  { %2042 = vtanh.f32 %v1394_v9 }
0x1352   :  { %v2041_v2 = vpop.eup %2040 }
0x1353   :  { %1401 = vrot.lane.b32.xlu1 %v2041_v2, %s2053_s22 }
0x1354   :  { %v2043_v53 = vpop.eup %2042 }
0x1355   :  { %1403 = vrot.lane.b32.xlu0 %v2043_v53, %s2053_s22 }
0x1357   :  { %497 = vrot.lane.b32.xlu1 %v2356_v27, %s2053_s22  ;;  %v1397_v27 = vsub.f32 1.0, %v2037_v14 }
0x1359   :  { %499 = vrot.lane.b32.xlu0 %v2358_v28, %s2053_s22 }
0x135b   :  { %599 = vrot.lane.b32.xlu1 %v2381_v22, %s2053_s22  ;;  %v1409_v22 = vmul.f32 %v2037_v14, %v2558_v38 }
0x135d   :  { %601 = vrot.lane.b32.xlu0 %v2383_v23, %s2053_s22 }
0x135f   :  { %701 = vrot.lane.b32.xlu1 %v2406_v18, %s2053_s22  ;;  %v1398_v18 = vsub.f32 1.0, %v2039_v55 }
0x1361   :  { %703 = vrot.lane.b32.xlu0 %v2408_v20, %s2053_s22 }
0x1363   :  { %803 = vrot.lane.b32.xlu1 %v2431_v7, %s2053_s22 }
0x1365   :  { %805 = vrot.lane.b32.xlu0 %v2433_v10, %s2053_s22  ;;  %v1410_v10 = vmul.f32 %v2039_v55, %v2560_v17 }
0x1367   :  { %905 = vrot.lane.b32.xlu1 %v2456_v3, %s2053_s22 }
0x1369   :  { %907 = vrot.lane.b32.xlu0 %v2458_v4, %s2053_s22 }
0x136b   :  { %1007 = vrot.lane.b32.xlu1 %v2481_v63, %s2053_s22 }
0x136d   :  { %1009 = vrot.lane.b32.xlu0 %v2483_v56, %s2053_s22 }
0x136f   :  { %1109 = vrot.lane.b32.xlu1 %v2517_v51, %s2053_s22 }
0x1371   :  { %1111 = vrot.lane.b32.xlu0 %v2519_v25, %s2053_s22 }
0x1373   :  { %1211 = vrot.lane.b32.xlu1 %v2542_v46, %s2053_s22 }
0x1375   :  { %1213 = vrot.lane.b32.xlu0 %v2544_v36, %s2053_s22 }
0x1377   :  { %1313 = vrot.lane.b32.xlu1 %v2558_v38, %s2053_s22 }
0x1379   :  { %1315 = vrot.lane.b32.xlu0 %v2560_v17, %s2053_s22 }
0x13c5   :  { %v1402_v28 = vpop.permute.xlu1 %1401 }
0x13c6   :  { %v1407_v23 = vmul.f32 %v1402_v28, %v1397_v27 }
0x13c7   :  { %v1404_v20 = vpop.permute.xlu0 %1403 }
0x13c8   :  { %v1411_v7 = vadd.f32 %v1409_v22, %v1407_v23  ;;  %v1408_v3 = vmul.f32 %v1404_v20, %v1398_v18 }
0x13c9   :  { %v498_v4 = vpop.permute.xlu1 %497 }
0x13ca   :  { %v1412_v63 = vadd.f32 %v1410_v10, %v1408_v3  ;;  %503 = vst.msk [vmem:[#allocation3] sm:$0xff] %vm323_vm1, %v498_v4  ;;  %1415 = vrot.lane.b32.xlu1 %v1411_v7, %s2053_s22 }
0x13cb   :  { %v500_v56 = vpop.permute.xlu0 %499 }
0x13cc   :  { %504 = vst.msk [vmem:[#allocation3 + $0x8] sm:$0xff] %vm323_vm1, %v500_v56  ;;  %1417 = vrot.lane.b32.xlu0 %v1412_v63, %s2053_s22 }
0x13cd   :  { %v600_v51 = vpop.permute.xlu1 %599 }
0x13ce   :  { %605 = vst.msk [vmem:[#allocation3 + $0x10] sm:$0xff] %vm323_vm1, %v600_v51 }
0x13cf   :  { %v602_v25 = vpop.permute.xlu0 %601 }
0x13d0   :  { %606 = vst.msk [vmem:[#allocation3 + $0x18] sm:$0xff] %vm323_vm1, %v602_v25 }
0x13d1   :  { %v702_v46 = vpop.permute.xlu1 %701  ;;  %v1423_v36 = vld [vmem:[#allocation3] sm:$0xff] }
0x13d2   :  { %707 = vst.msk [vmem:[#allocation3 + $0x20] sm:$0xff] %vm323_vm1, %v702_v46  ;;  %1847 = vmatprep.mubr.msk.f32.mxu1 %vm323_vm1, %v1423_v36 }
0x13d3   :  { %v704_v34 = vpop.permute.xlu0 %703  ;;  %v1424_v35 = vld [vmem:[#allocation3 + $0x8] sm:$0xff] }
0x13d4   :  { %708 = vst.msk [vmem:[#allocation3 + $0x28] sm:$0xff] %vm323_vm1, %v704_v34  ;;  %1848 = vmatmul.mubr.msk.f32.vlgmr.msra.gmra.mrb[24].mxu1 %vm323_vm1, %v1424_v35 }
0x13d5   :  { %v804_v58 = vpop.permute.xlu1 %803  ;;  %v1425_v11 = vld [vmem:[#allocation3 + $0x10] sm:$0xff] }
0x13d6   :  { %809 = vst.msk [vmem:[#allocation3 + $0x30] sm:$0xff] %vm323_vm1, %v804_v58  ;;  %1850 = vmatprep.mubr.msk.f32.mxu1 %vm323_vm1, %v1425_v11 }
0x13d7   :  { %v806_v37 = vpop.permute.xlu0 %805  ;;  %v1426_v12 = vld [vmem:[#allocation3 + $0x18] sm:$0xff] }
0x13d8   :  { %810 = vst.msk [vmem:[#allocation3 + $0x38] sm:$0xff] %vm323_vm1, %v806_v37  ;;  %1851 = vmatmul.mubr.msk.f32.gmra.mrb[26].mxu1 %vm323_vm1, %v1426_v12 }
0x13d9   :  { %v906_v13 = vpop.permute.xlu1 %905  ;;  %v1427_v15 = vld [vmem:[#allocation3 + $0x20] sm:$0xff] }
0x13da   :  { %911 = vst.msk [vmem:[#allocation3 + $0x40] sm:$0xff] %vm323_vm1, %v906_v13  ;;  %1853 = vmatprep.mubr.msk.f32.mxu1 %vm323_vm1, %v1427_v15 }
0x13db   :  { %v908_v38 = vpop.permute.xlu0 %907  ;;  %v1428_v17 = vld [vmem:[#allocation3 + $0x28] sm:$0xff] }
0x13dc   :  { %912 = vst.msk [vmem:[#allocation3 + $0x48] sm:$0xff] %vm323_vm1, %v908_v38  ;;  %1854 = vmatmul.mubr.msk.f32.gmra.mrb[28].mxu1 %vm323_vm1, %v1428_v17 }
0x13dd   :  { %v1008_v16 = vpop.permute.xlu1 %1007  ;;  %v1429_v8 = vld [vmem:[#allocation3 + $0x30] sm:$0xff] }
0x13de   :  { %1013 = vst.msk [vmem:[#allocation3 + $0x50] sm:$0xff] %vm323_vm1, %v1008_v16  ;;  %1856 = vmatprep.mubr.msk.f32.mxu1 %vm323_vm1, %v1429_v8 }
0x13df   :  { %v1010_v42 = vpop.permute.xlu0 %1009  ;;  %v1430_v39 = vld [vmem:[#allocation3 + $0x38] sm:$0xff] }
0x13e0   :  { %1014 = vst.msk [vmem:[#allocation3 + $0x58] sm:$0xff] %vm323_vm1, %v1010_v42  ;;  %1857 = vmatmul.mubr.msk.f32.gmra.mrb[30].mxu1 %vm323_vm1, %v1430_v39 }
0x13e1   :  { %v1110_v44 = vpop.permute.xlu1 %1109  ;;  %v1431_v30 = vld [vmem:[#allocation3 + $0x40] sm:$0xff] }
0x13e2   :  { %1115 = vst.msk [vmem:[#allocation3 + $0x60] sm:$0xff] %vm323_vm1, %v1110_v44  ;;  %1859 = vmatprep.mubr.msk.f32.mxu1 %vm323_vm1, %v1431_v30 }
0x13e3   :  { %v1112_v48 = vpop.permute.xlu0 %1111  ;;  %v1432_v40 = vld [vmem:[#allocation3 + $0x48] sm:$0xff] }
0x13e4   :  { %1116 = vst.msk [vmem:[#allocation3 + $0x68] sm:$0xff] %vm323_vm1, %v1112_v48  ;;  %1860 = vmatmul.mubr.msk.f32.gmra.mrb[32].mxu1 %vm323_vm1, %v1432_v40 }
0x13e5   :  { %v1212_v45 = vpop.permute.xlu1 %1211  ;;  %v1433_v49 = vld [vmem:[#allocation3 + $0x50] sm:$0xff] }
0x13e6   :  { %1217 = vst.msk [vmem:[#allocation3 + $0x70] sm:$0xff] %vm323_vm1, %v1212_v45  ;;  %1862 = vmatprep.mubr.msk.f32.mxu1 %vm323_vm1, %v1433_v49 }
0x13e7   :  { %v1214_v41 = vpop.permute.xlu0 %1213  ;;  %v1434_v50 = vld [vmem:[#allocation3 + $0x58] sm:$0xff] }
0x13e8   :  { %1218 = vst.msk [vmem:[#allocation3 + $0x78] sm:$0xff] %vm323_vm1, %v1214_v41  ;;  %1863 = vmatmul.mubr.msk.f32.gmra.mrb[34].mxu1 %vm323_vm1, %v1434_v50 }
0x13e9   :  { %v1314_v52 = vpop.permute.xlu1 %1313  ;;  %v1435_v21 = vld [vmem:[#allocation3 + $0x60] sm:$0xff] }
0x13ea   :  { %1319 = vst.msk [vmem:[#allocation3 + $0x80] sm:$0xff] %vm323_vm1, %v1314_v52  ;;  %1865 = vmatprep.mubr.msk.f32.mxu1 %vm323_vm1, %v1435_v21 }
0x13eb   :  { %v1316_v26 = vpop.permute.xlu0 %1315  ;;  %v1436_v5 = vld [vmem:[#allocation3 + $0x68] sm:$0xff] }
0x13ec   :  { %1320 = vst.msk [vmem:[#allocation3 + $0x88] sm:$0xff] %vm323_vm1, %v1316_v26  ;;  %1866 = vmatmul.mubr.msk.f32.gmra.mrb[36].mxu1 %vm323_vm1, %v1436_v5 }
0x13ed   :  { %v1437_v59 = vld [vmem:[#allocation3 + $0x70] sm:$0xff] }
0x13ee   :  { %1868 = vmatprep.mubr.msk.f32.mxu1 %vm323_vm1, %v1437_v59 }
0x13ef   :  { %v1438_v43 = vld [vmem:[#allocation3 + $0x78] sm:$0xff] }
0x13f0   :  { %1869 = vmatmul.mubr.msk.f32.gmra.mrb[38].mxu1 %vm323_vm1, %v1438_v43 }
0x13f1   :  { %v1439_v14 = vld [vmem:[#allocation3 + $0x80] sm:$0xff] }
0x13f2   :  { %1871 = vmatprep.mubr.msk.f32.mxu1 %vm323_vm1, %v1439_v14 }
0x13f3   :  { %v1440_v54 = vld [vmem:[#allocation3 + $0x88] sm:$0xff] }
0x13f4   :  { %1872 = vmatmul.mubr.msk.f32.gmra.mrb[40].mxu1 %vm323_vm1, %v1440_v54 }
0x143c   :  { %v1416_v19 = vpop.permute.xlu1 %1415 }
0x143d   :  { %1421 = vst.msk [vmem:[#allocation3 + $0x90] sm:$0xff] %vm323_vm1, %v1416_v19 }
0x143e   :  { %v1418_v55 = vpop.permute.xlu0 %1417 }
0x143f   :  { %1422 = vst.msk [vmem:[#allocation3 + $0x98] sm:$0xff] %vm323_vm1, %v1418_v55 }
0x1444   :  { %v1441_v57 = vld [vmem:[#allocation3 + $0x90] sm:$0xff] }
0x1445   :  { %1874 = vmatprep.mubr.msk.f32.mxu1 %vm323_vm1, %v1441_v57 }
0x1446   :  { %v1442_v24 = vld [vmem:[#allocation3 + $0x98] sm:$0xff] }
0x1447   :  { %1875 = vmatmul.mubr.msk.f32.gmra.mrb[42].mxu1 %vm323_vm1, %v1442_v24 }
0x14a7   :  { %v1849_v32 = vpop.f32.mrb[24].mxu1 }
0x14a8   :  { %v1583_v33 = vadd.f32 %v1849_v32, %v2679_v31  ;;  %v1577_v47 = vpop.f32.mrb[25].mxu1 }
0x14a9   :  { %v1578_v1 = vadd.f32 %v1577_v47, %v2679_v31 }
0x14aa   :  { %1680 = vst.msk [vmem:[%s2786_s5 + $0x8] sm:$0xff] %vm1678_vm2, %v1583_v33 }
0x14ab   :  { %1679 = vst.msk [vmem:[%s2786_s5] sm:$0xff] %vm1678_vm2, %v1578_v1  ;;  %v1852_v9 = vpop.f32.mrb[26].mxu1 }
0x14ac   :  { %v1593_v29 = vadd.f32 %v1852_v9, %v2679_v31  ;;  %v1587_v0 = vpop.f32.mrb[27].mxu1 }
0x14ad   :  { %v1588_v60 = vadd.f32 %v1587_v0, %v2679_v31 }
0x14ae   :  { %v1682_v6 = vadd.f32 %v1593_v29, %v1583_v33 }
0x14af   :  { %v1681_v61 = vadd.f32 %v1588_v60, %v1578_v1  ;;  %v1855_v62 = vpop.f32.mrb[28].mxu1 }
0x14b0   :  { %1684 = vst.msk [vmem:[%s2786_s5 + $0x18] sm:$0xff] %vm1678_vm2, %v1682_v6  ;;  %v1603_v2 = vadd.f32 %v1855_v62, %v2679_v31  ;;  %v1597_v53 = vpop.f32.mrb[29].mxu1 }
0x14b1   :  { %1683 = vst.msk [vmem:[%s2786_s5 + $0x10] sm:$0xff] %vm1678_vm2, %v1681_v61  ;;  %v1598_v27 = vadd.f32 %v1597_v53, %v2679_v31 }
0x14b2   :  { %v1686_v28 = vadd.f32 %v1682_v6, %v1603_v2 }
0x14b3   :  { %v1685_v22 = vadd.f32 %v1681_v61, %v1598_v27  ;;  %v1858_v23 = vpop.f32.mrb[30].mxu1 }
0x14b4   :  { %1688 = vst.msk [vmem:[%s2786_s5 + $0x28] sm:$0xff] %vm1678_vm2, %v1686_v28  ;;  %v1613_v18 = vadd.f32 %v1858_v23, %v2679_v31  ;;  %v1607_v20 = vpop.f32.mrb[31].mxu1 }
0x14b5   :  { %1687 = vst.msk [vmem:[%s2786_s5 + $0x20] sm:$0xff] %vm1678_vm2, %v1685_v22  ;;  %v1608_v7 = vadd.f32 %v1607_v20, %v2679_v31 }
0x14b6   :  { %v1690_v10 = vadd.f32 %v1686_v28, %v1613_v18 }
0x14b7   :  { %v1689_v3 = vadd.f32 %v1685_v22, %v1608_v7  ;;  %v1861_v4 = vpop.f32.mrb[32].mxu1 }
0x14b8   :  { %1692 = vst.msk [vmem:[%s2786_s5 + $0x38] sm:$0xff] %vm1678_vm2, %v1690_v10  ;;  %v1623_v63 = vadd.f32 %v1861_v4, %v2679_v31  ;;  %v1617_v56 = vpop.f32.mrb[33].mxu1 }
0x14b9   :  { %1691 = vst.msk [vmem:[%s2786_s5 + $0x30] sm:$0xff] %vm1678_vm2, %v1689_v3  ;;  %v1618_v51 = vadd.f32 %v1617_v56, %v2679_v31 }
0x14ba   :  { %v1694_v25 = vadd.f32 %v1690_v10, %v1623_v63 }
0x14bb   :  { %v1693_v46 = vadd.f32 %v1689_v3, %v1618_v51  ;;  %v1864_v36 = vpop.f32.mrb[34].mxu1 }
0x14bc   :  { %1696 = vst.msk [vmem:[%s2786_s5 + $0x48] sm:$0xff] %vm1678_vm2, %v1694_v25  ;;  %v1633_v34 = vadd.f32 %v1864_v36, %v2679_v31  ;;  %v1627_v35 = vpop.f32.mrb[35].mxu1 }
0x14bd   :  { %1695 = vst.msk [vmem:[%s2786_s5 + $0x40] sm:$0xff] %vm1678_vm2, %v1693_v46  ;;  %v1628_v58 = vadd.f32 %v1627_v35, %v2679_v31 }
0x14be   :  { %v1698_v11 = vadd.f32 %v1694_v25, %v1633_v34 }
0x14bf   :  { %v1697_v37 = vadd.f32 %v1693_v46, %v1628_v58  ;;  %v1867_v12 = vpop.f32.mrb[36].mxu1 }
0x14c0   :  { %1700 = vst.msk [vmem:[%s2786_s5 + $0x58] sm:$0xff] %vm1678_vm2, %v1698_v11  ;;  %v1643_v13 = vadd.f32 %v1867_v12, %v2679_v31  ;;  %v1637_v15 = vpop.f32.mrb[37].mxu1 }
0x14c1   :  { %1699 = vst.msk [vmem:[%s2786_s5 + $0x50] sm:$0xff] %vm1678_vm2, %v1697_v37  ;;  %v1638_v38 = vadd.f32 %v1637_v15, %v2679_v31 }
0x14c2   :  { %v1702_v17 = vadd.f32 %v1698_v11, %v1643_v13 }
0x14c3   :  { %v1701_v16 = vadd.f32 %v1697_v37, %v1638_v38  ;;  %v1870_v8 = vpop.f32.mrb[38].mxu1 }
0x14c4   :  { %1704 = vst.msk [vmem:[%s2786_s5 + $0x68] sm:$0xff] %vm1678_vm2, %v1702_v17  ;;  %v1653_v42 = vadd.f32 %v1870_v8, %v2679_v31  ;;  %v1647_v39 = vpop.f32.mrb[39].mxu1 }
0x14c5   :  { %1703 = vst.msk [vmem:[%s2786_s5 + $0x60] sm:$0xff] %vm1678_vm2, %v1701_v16  ;;  %v1648_v44 = vadd.f32 %v1647_v39, %v2679_v31 }
0x14c6   :  { %v1706_v30 = vadd.f32 %v1702_v17, %v1653_v42 }
0x14c7   :  { %v1705_v48 = vadd.f32 %v1701_v16, %v1648_v44  ;;  %v1873_v40 = vpop.f32.mrb[40].mxu1 }
0x14c8   :  { %1708 = vst.msk [vmem:[%s2786_s5 + $0x78] sm:$0xff] %vm1678_vm2, %v1706_v30  ;;  %v1663_v45 = vadd.f32 %v1873_v40, %v2679_v31  ;;  %v1657_v49 = vpop.f32.mrb[41].mxu1 }
0x14c9   :  { %1707 = vst.msk [vmem:[%s2786_s5 + $0x70] sm:$0xff] %vm1678_vm2, %v1705_v48  ;;  %v1658_v41 = vadd.f32 %v1657_v49, %v2679_v31 }
0x14ca   :  { %v1710_v50 = vadd.f32 %v1706_v30, %v1663_v45 }
0x14cb   :  { %v1709_v52 = vadd.f32 %v1705_v48, %v1658_v41 }
0x14cc   :  { %1712 = vst.msk [vmem:[%s2786_s5 + $0x88] sm:$0xff] %vm1678_vm2, %v1710_v50 }
0x14cd   :  { %1711 = vst.msk [vmem:[%s2786_s5 + $0x80] sm:$0xff] %vm1678_vm2, %v1709_v52 }
0x151a   :  { %v1876_v21 = vpop.f32.mrb[42].mxu1 }
0x151b   :  { %v1673_v26 = vadd.f32 %v1876_v21, %v2679_v31  ;;  %v1667_v5 = vpop.f32.mrb[43].mxu1 }
0x151c   :  { %v1668_v59 = vadd.f32 %v1667_v5, %v2679_v31 }
0x151d   :  { %v1714_v43 = vadd.f32 %v1710_v50, %v1673_v26 }
0x151e   :  { %v1713_v14 = vadd.f32 %v1709_v52, %v1668_v59 }
0x151f   :  { %1716 = vst.msk [vmem:[%s2786_s5 + $0x98] sm:$0xff] %vm1678_vm2, %v1714_v43 }
0x1520   :  { %1715 = vst.msk [vmem:[%s2786_s5 + $0x90] sm:$0xff] %vm1678_vm2, %v1713_v14 }

</bundles_post_ra>
